<compile_context>
chip_gen: v6e
topology: v6e:2x2x1
jax: 0.10.0
libtpu: 0.0.40
codegen_flags: <defaults>
</compile_context>

<pallas_src>
import functools
import math

import jax
import jax.numpy as jnp
from jax import lax
from jax.experimental import pallas as pl
from jax.experimental.pallas import tpu as pltpu

# TODO(synk): LayerNorm class is not given in the spec; MCAN's LayerNorm
# (biased variance, eps=1e-6) is assumed.  torch.nn.LayerNorm default is 1e-5.
LN_EPS = 1e-6


def _layer_norm(x, gamma, beta, eps=LN_EPS):
    mean = jnp.mean(x, axis=-1, keepdims=True)
    var = jnp.mean(jnp.square(x - mean), axis=-1, keepdims=True)
    return (x - mean) * lax.rsqrt(var + eps) * gamma + beta


def _choose_batch_block(batch, seq, target_rows=256, min_grid=2, max_rows=1024):
    """Pick the batch fold B_BLK: the smallest divisor of `batch` reaching
    target_rows GEMM rows, subject to grid >= min_grid (keep both v7x TCs
    busy) and a VMEM-friendly row cap; else the largest feasible divisor."""
    best = 1
    for d in range(1, batch + 1):
        if batch % d:
            continue
        if batch >= min_grid and batch // d < min_grid:
            break
        if d > 1 and d * seq > max_rows:
            break
        best = d
        if d * seq >= target_rows:
            break
    return best


def _const_spec(shape):
    """BlockSpec for grid-invariant operands (weights / biases / LN params):
    constant index_map (fetched once) + single-buffered (no 2x VMEM)."""
    zeros = (0,) * len(shape)
    return pl.BlockSpec(shape, lambda i: zeros, pipeline_mode=pl.Buffered(1))


# ---------------------------------------------------------------------------
# Fused MHAtt (+ residual + LayerNorm) kernel: one grid step per batch block.
# ---------------------------------------------------------------------------
def _mhatt_block_kernel(q_in_ref, kv_in_ref, mask_ref,
                        wq_ref, bq_ref, wkv_ref, bkv_ref, wm_ref, bm_ref,
                        gamma_ref, beta_ref, o_ref, atted_ref, *, n_head):
    b_blk, Sq, H = q_in_ref.shape
    Skv = kv_in_ref.shape[1]
    d_k = H // n_head
    cd = q_in_ref.dtype                       # matmul operand dtype (f32 / bf16)

    x2 = q_in_ref[...].reshape(b_blk * Sq, H)          # folded-batch GEMM rows
    kv2 = kv_in_ref[...].reshape(b_blk * Skv, H)

    # Packed projections over all folded rows (f32 accumulation).
    q = jnp.dot(x2, wq_ref[...], preferred_element_type=jnp.float32) + bq_ref[...]
    kvp = jnp.dot(kv2, wkv_ref[...], preferred_element_type=jnp.float32) + bkv_ref[...]

    # Hoisted out of the loops: scale q by 1/sqrt(d_k) and cast operands once.
    qc = (q * (1.0 / math.sqrt(d_k))).astype(cd)       # (b_blk*Sq, H)
    kc = kvp[:, :H].astype(cd)                          # (b_blk*Skv, H)
    vc = kvp[:, H:].astype(cd)

    neg_inf = jnp.float32(-1e9)
    for b in range(b_blk):                    # small, unrolled
        rq = b * Sq
        rkv = b * Skv
        # Mask broadcast hoisted out of the head loop.
        masked = jnp.broadcast_to(mask_ref[b, 0], (Sq, Skv)) > 0
        for h in range(n_head):               # unrolled; one head live at a time
            c0 = h * d_k
            qh = qc[rq:rq + Sq, c0:c0 + d_k]
            kh = kc[rkv:rkv + Skv, c0:c0 + d_k]
            vh = vc[rkv:rkv + Skv, c0:c0 + d_k]
            # Contract last dims directly — no explicit K transpose.
            s = lax.dot_general(qh, kh, (((1,), (1,)), ((), ())),
                                preferred_element_type=jnp.float32)   # (Sq, Skv)
            s = jnp.where(masked, neg_inf, s)      # matches torch masked_fill
            smax = jnp.max(s, axis=-1, keepdims=True)
            e = jnp.exp(s - smax)
            denom = jnp.sum(e, axis=-1, keepdims=True)
            p = e * pl.reciprocal(denom, approx=True)   # denom >= 1 -> safe
            # TODO(synk): attention-map dropout omitted (eval mode / identity).
            atted_ref[rq:rq + Sq, c0:c0 + d_k] = jnp.dot(
                p.astype(cd), vh, preferred_element_type=jnp.float32)

    # Merge projection on the lane-dense attention output, then residual + LN
    # in f32.
    merged = jnp.dot(atted_ref[...].astype(cd), wm_ref[...],
                     preferred_element_type=jnp.float32) + bm_ref[...]
    out = _layer_norm(x2.astype(jnp.float32) + merged,
                      gamma_ref[...], beta_ref[...])
    o_ref[...] = out.reshape(b_blk, Sq, H)


def mhatt_block(p, q_in, kv_in, mask, *, n_head, compute_dtype=jnp.bfloat16):
    """Fused MHAtt + residual + LayerNorm.  q_in:(B,Sq,H), kv_in:(B,Skv,H),
    mask:(B,1,1,Skv) int (nonzero = masked key)."""
    B, Sq, H = q_in.shape
    Skv = kv_in.shape[1]
    d_k = H // n_head
    b_blk = _choose_batch_block(B, Sq)
    grid = (B // b_blk,)

    isz = jnp.dtype(compute_dtype).itemsize
    flops = (2 * B * Sq * H * H                 # q projection
             + 2 * B * Skv * H * 2 * H          # packed k|v projection
             + 4 * B * n_head * Sq * Skv * d_k  # scores + att@v
             + 2 * B * Sq * H * H)              # merge projection
    bytes_accessed = (isz * (B * Sq * H + B * Skv * H + 4 * H * H)
                      + 4 * (B * Sq * H + B * Skv + 6 * H))
    cost = pl.CostEstimate(flops=int(flops),
                           transcendentals=int(B * n_head * Sq * Skv),
                           bytes_accessed=int(bytes_accessed))

    return pl.pallas_call(
        functools.partial(_mhatt_block_kernel, n_head=n_head),
        out_shape=jax.ShapeDtypeStruct((B, Sq, H), jnp.float32),
        grid_spec=pltpu.PrefetchScalarGridSpec(
            num_scalar_prefetch=0,
            grid=grid,
            in_specs=[
                pl.BlockSpec((b_blk, Sq, H), lambda i: (i, 0, 0)),        # q input
                pl.BlockSpec((b_blk, Skv, H), lambda i: (i, 0, 0)),       # kv input
                pl.BlockSpec((b_blk, 1, 1, Skv), lambda i: (i, 0, 0, 0)),  # mask
                _const_spec((H, H)),          # Wq^T
                _const_spec((1, H)),          # bq
                _const_spec((H, 2 * H)),      # [Wk|Wv]^T
                _const_spec((1, 2 * H)),      # [bk|bv]
                _const_spec((H, H)),          # Wm^T
                _const_spec((1, H)),          # bm
                _const_spec((1, H)),          # LN gamma
                _const_spec((1, H)),          # LN beta
            ],
            out_specs=pl.BlockSpec((b_blk, Sq, H), lambda i: (i, 0, 0)),
            scratch_shapes=[pltpu.VMEM((b_blk * Sq, H), jnp.float32)]),
        compiler_params=pltpu.CompilerParams(
            dimension_semantics=("parallel",)),
        cost_estimate=cost,
    )(q_in.astype(compute_dtype), kv_in.astype(compute_dtype),
      mask.astype(jnp.int32),
      p["wq_t"], p["bq"], p["wkv_t"], p["bkv"], p["wm_t"], p["bm"],
      p["gamma"], p["beta"])


# ---------------------------------------------------------------------------
# Fused FFN (+ residual + LayerNorm) kernel.
# ---------------------------------------------------------------------------
def _ffn_block_kernel(x_ref, w1_ref, b1_ref, w2_ref, b2_ref,
                      gamma_ref, beta_ref, o_ref):
    b_blk, S, H = x_ref.shape
    cd = x_ref.dtype
    x2 = x_ref[...].reshape(b_blk * S, H)
    h = jnp.dot(x2, w1_ref[...], preferred_element_type=jnp.float32) + b1_ref[...]
    h = jnp.maximum(h, 0.0)                                           # ReLU
    # TODO(synk): MLP dropout omitted (eval mode / identity).
    y = jnp.dot(h.astype(cd), w2_ref[...],
                preferred_element_type=jnp.float32) + b2_ref[...]
    out = _layer_norm(x2.astype(jnp.float32) + y, gamma_ref[...], beta_ref[...])
    o_ref[...] = out.reshape(b_blk, S, H)


def ffn_block(p, x, *, compute_dtype=jnp.bfloat16):
    B, S, H = x.shape
    F = p["w1_t"].shape[1]
    b_blk = _choose_batch_block(B, S)
    grid = (B // b_blk,)
    isz = jnp.dtype(compute_dtype).itemsize
    cost = pl.CostEstimate(
        flops=int(4 * B * S * H * F), transcendentals=0,
        bytes_accessed=int(isz * (B * S * H + 2 * H * F)
                           + 4 * (B * S * H + F + 3 * H)))
    return pl.pallas_call(
        _ffn_block_kernel,
        out_shape=jax.ShapeDtypeStruct((B, S, H), jnp.float32),
        grid_spec=pltpu.PrefetchScalarGridSpec(
            num_scalar_prefetch=0,
            grid=grid,
            in_specs=[
                pl.BlockSpec((b_blk, S, H), lambda i: (i, 0, 0)),
                _const_spec((H, F)),      # W1^T
                _const_spec((1, F)),      # b1
                _const_spec((F, H)),      # W2^T
                _const_spec((1, H)),      # b2
                _const_spec((1, H)),      # LN gamma
                _const_spec((1, H)),      # LN beta
            ],
            out_specs=pl.BlockSpec((b_blk, S, H), lambda i: (i, 0, 0))),
        compiler_params=pltpu.CompilerParams(dimension_semantics=("parallel",)),
        cost_estimate=cost,
    )(x.astype(compute_dtype), p["w1_t"], p["b1"], p["w2_t"], p["b2"],
      p["gamma"], p["beta"])


# ---------------------------------------------------------------------------
# Parameter prep (ONCE, outside the forward): transpose to (in, out) layout,
# pack Wk|Wv, reshape biases/LN params, cast weights to the MXU operand dtype
# (bf16 by default — v5e/v6e/v7x MXUs are bf16-native).
# ---------------------------------------------------------------------------
def prepare_mhatt_params(raw_mh, ln_gamma, ln_beta, compute_dtype):
    cd = compute_dtype
    H = raw_mh["wq"].shape[0]
    return {
        "wq_t": raw_mh["wq"].T.astype(cd),
        "bq": raw_mh["bq"].reshape(1, H).astype(jnp.float32),
        "wkv_t": jnp.concatenate([raw_mh["wk"].T, raw_mh["wv"].T], axis=1).astype(cd),
        "bkv": jnp.concatenate([raw_mh["bk"], raw_mh["bv"]]).reshape(1, 2 * H)
                  .astype(jnp.float32),
        "wm_t": raw_mh["wm"].T.astype(cd),
        "bm": raw_mh["bm"].reshape(1, H).astype(jnp.float32),
        "gamma": ln_gamma.reshape(1, H).astype(jnp.float32),
        "beta": ln_beta.reshape(1, H).astype(jnp.float32),
    }


def prepare_ffn_params(raw_ffn, ln_gamma, ln_beta, compute_dtype):
    cd = compute_dtype
    F, H = raw_ffn["w1"].shape
    return {
        "w1_t": raw_ffn["w1"].T.astype(cd),        # (H, F)
        "b1": raw_ffn["b1"].reshape(1, F).astype(jnp.float32),
        "w2_t": raw_ffn["w2"].T.astype(cd),        # (F, H)
        "b2": raw_ffn["b2"].reshape(1, H).astype(jnp.float32),
        "gamma": ln_gamma.reshape(1, H).astype(jnp.float32),
        "beta": ln_beta.reshape(1, H).astype(jnp.float32),
    }


def prepare_sga_params(raw, compute_dtype=jnp.bfloat16):
    return {
        "mh1": prepare_mhatt_params(raw["mh1"], raw["ln1_g"], raw["ln1_b"], compute_dtype),
        "mh2": prepare_mhatt_params(raw["mh2"], raw["ln2_g"], raw["ln2_b"], compute_dtype),
        "ffn": prepare_ffn_params(raw["ffn"], raw["ln3_g"], raw["ln3_b"], compute_dtype),
    }


# ---------------------------------------------------------------------------
# SGA forward: x = LN1(x + MHAtt(x,x,x,x_mask)); x = LN2(x + MHAtt(y,y,x,y_mask));
#              x = LN3(x + FFN(x)).   (dropouts = identity)
# ---------------------------------------------------------------------------
def sga_forward(params, x, y, x_mask, y_mask, *, n_head,
                compute_dtype=jnp.bfloat16):
    x = mhatt_block(params["mh1"], x, x, x_mask, n_head=n_head,
                    compute_dtype=compute_dtype)
    x = mhatt_block(params["mh2"], x, y, y_mask, n_head=n_head,
                    compute_dtype=compute_dtype)
    x = ffn_block(params["ffn"], x, compute_dtype=compute_dtype)
    return x


# ---------------------------------------------------------------------------
# Pure-JAX reference (PyTorch semantics, eval mode) for validation.
# ---------------------------------------------------------------------------
def _mhatt_reference(raw_mh, q_in, kv_in, mask, n_head):
    B, Sq, H = q_in.shape
    d_k = H // n_head

    def proj(t, w, b):
        return (t @ w.T + b).reshape(B, -1, n_head, d_k).transpose(0, 2, 1, 3)

    vh = proj(kv_in, raw_mh["wv"], raw_mh["bv"])
    kh = proj(kv_in, raw_mh["wk"], raw_mh["bk"])
    qh = proj(q_in, raw_mh["wq"], raw_mh["bq"])
    scores = jnp.einsum("bhqd,bhkd->bhqk", qh, kh) / math.sqrt(d_k)
    scores = jnp.where(mask > 0, -1e9, scores)
    p = jax.nn.softmax(scores, axis=-1)
    atted = jnp.einsum("bhqk,bhkd->bhqd", p, vh)
    atted = atted.transpose(0, 2, 1, 3).reshape(B, Sq, H)
    return atted @ raw_mh["wm"].T + raw_mh["bm"]


def _layer_norm_reference(x, gamma, beta, eps=LN_EPS):
    mean = jnp.mean(x, axis=-1, keepdims=True)
    var = jnp.mean(jnp.square(x - mean), axis=-1, keepdims=True)
    return (x - mean) * lax.rsqrt(var + eps) * gamma + beta


def sga_reference(raw, x, y, x_mask, y_mask, *, n_head):
    x = _layer_norm_reference(x + _mhatt_reference(raw["mh1"], x, x, x_mask, n_head),
                              raw["ln1_g"], raw["ln1_b"])
    x = _layer_norm_reference(x + _mhatt_reference(raw["mh2"], x, y, y_mask, n_head),
                              raw["ln2_g"], raw["ln2_b"])
    h = jnp.maximum(x @ raw["ffn"]["w1"].T + raw["ffn"]["b1"], 0.0)
    ff = h @ raw["ffn"]["w2"].T + raw["ffn"]["b2"]
    x = _layer_norm_reference(x + ff, raw["ln3_g"], raw["ln3_b"])
    return x


# ---------------------------------------------------------------------------
if __name__ == "__main__":
    B, S_x, S_y, H, n_head = 4, 8, 16, 32, 4      # hidden_size=32, multi_head=4
    FF = 4 * H                                     # ff_size=128

    key = jax.random.PRNGKey(0)
    ks = iter(jax.random.split(key, 32))

    def lin(out_dim, in_dim):
        w = jax.random.normal(next(ks), (out_dim, in_dim), jnp.float32) / math.sqrt(in_dim)
        b = jax.random.normal(next(ks), (out_dim,), jnp.float32) * 0.01
        return w, b

    def mh_raw():
        wv, bv = lin(H, H); wk, bk = lin(H, H); wq, bq = lin(H, H); wm, bm = lin(H, H)
        return dict(wv=wv, bv=bv, wk=wk, bk=bk, wq=wq, bq=bq, wm=wm, bm=bm)

    def ln_params():
        g = 1.0 + 0.1 * jax.random.normal(next(ks), (H,), jnp.float32)
        b = 0.01 * jax.random.normal(next(ks), (H,), jnp.float32)
        return g, b

    mh1 = mh_raw()
    mh2 = mh_raw()
    w1, b1 = lin(FF, H)
    w2, b2 = lin(H, FF)
    ln1_g, ln1_b = ln_params()
    ln2_g, ln2_b = ln_params()
    ln3_g, ln3_b = ln_params()

    raw = {
        "mh1": mh1, "mh2": mh2,
        "ffn": dict(w1=w1, b1=b1, w2=w2, b2=b2),
        "ln1_g": ln1_g, "ln1_b": ln1_b,
        "ln2_g": ln2_g, "ln2_b": ln2_b,
        "ln3_g": ln3_g, "ln3_b": ln3_b,
    }

    x = jax.random.normal(next(ks), (B, S_x, H), jnp.float32)
    y = jax.random.normal(next(ks), (B, S_y, H), jnp.float32)

    # Masks: nonzero = masked key position (matches torch masked_fill semantics).
    x_len = jnp.array([S_x, S_x - 3, S_x - 1, 4], dtype=jnp.int32)
    y_len = jnp.array([S_y, S_y - 5, 7, S_y - 2], dtype=jnp.int32)
    x_mask = (jnp.arange(S_x, dtype=jnp.int32)[None, :] >= x_len[:, None]) \
        .astype(jnp.int32).reshape(B, 1, 1, S_x)
    y_mask = (jnp.arange(S_y, dtype=jnp.int32)[None, :] >= y_len[:, None]) \
        .astype(jnp.int32).reshape(B, 1, 1, S_y)

    ref = sga_reference(raw, x, y, x_mask, y_mask, n_head=n_head)
    ref = jax.block_until_ready(ref)

    # --- f32 operand path (strict-ish validation; only approx-reciprocal and
    #     op-order differences vs the pure-JAX reference) ---
    params_f32 = prepare_sga_params(raw, compute_dtype=jnp.float32)
    out = sga_forward(params_f32, x, y, x_mask, y_mask, n_head=n_head,
                      compute_dtype=jnp.float32)
    out = jax.block_until_ready(out)

    assert out.shape == (B, S_x, H)
    max_diff = float(jnp.max(jnp.abs(out - ref)))
    assert jnp.allclose(out, ref, atol=5e-3, rtol=5e-3), \
        f"mismatch vs reference, max abs diff = {max_diff}"

    # --- bf16 MXU-operand path (default / throughput path on all generations;
    #     softmax / LayerNorm / residual stay f32) ---
    params_bf16 = prepare_sga_params(raw, compute_dtype=jnp.bfloat16)
    out_bf16 = sga_forward(params_bf16, x, y, x_mask, y_mask, n_head=n_head,
                           compute_dtype=jnp.bfloat16)
    out_bf16 = jax.block_until_ready(out_bf16)
    assert bool(jnp.all(jnp.isfinite(out_bf16)))
    assert float(jnp.max(jnp.abs(out_bf16 - ref))) < 0.5  # loose sanity bound

    print("KERNEL_OK")
</pallas_src>

<mosaic_0001>
module attributes {stable_mosaic.version = 11 : i64} {
  func.func @_mhatt_block_kernel(%arg0: i32, %arg1: memref<2x8x32xf32, #tpu.memory_space<vmem>>, %arg2: memref<2x8x32xf32, #tpu.memory_space<vmem>>, %arg3: memref<2x1x1x8xi32, #tpu.memory_space<vmem>>, %arg4: memref<32x32xf32, #tpu.memory_space<vmem>>, %arg5: memref<1x32xf32, #tpu.memory_space<vmem>>, %arg6: memref<32x64xf32, #tpu.memory_space<vmem>>, %arg7: memref<1x64xf32, #tpu.memory_space<vmem>>, %arg8: memref<32x32xf32, #tpu.memory_space<vmem>>, %arg9: memref<1x32xf32, #tpu.memory_space<vmem>>, %arg10: memref<1x32xf32, #tpu.memory_space<vmem>>, %arg11: memref<1x32xf32, #tpu.memory_space<vmem>>, %arg12: memref<2x8x32xf32, #tpu.memory_space<vmem>>, %arg13: memref<16x32xf32, #tpu.memory_space<vmem>>) attributes {dimension_semantics = [#tpu.dimension_semantics<parallel>], iteration_bounds = array<i64: 2>, scalar_prefetch = 0 : i64, scratch_operands = 1 : i64, tpu.core_type = #tpu.core_type<tc>, window_params = [{transform_indices = @transform_0, window_bounds = array<i64: 2, 8, 32>}, {transform_indices = @transform_1, window_bounds = array<i64: 2, 8, 32>}, {transform_indices = @transform_2, window_bounds = array<i64: 2, 1, 1, 8>}, {pipeline_mode = #tpu.pipeline_mode<synchronous>, transform_indices = @transform_3, window_bounds = array<i64: 32, 32>}, {pipeline_mode = #tpu.pipeline_mode<synchronous>, transform_indices = @transform_4, window_bounds = array<i64: 1, 32>}, {pipeline_mode = #tpu.pipeline_mode<synchronous>, transform_indices = @transform_5, window_bounds = array<i64: 32, 64>}, {pipeline_mode = #tpu.pipeline_mode<synchronous>, transform_indices = @transform_6, window_bounds = array<i64: 1, 64>}, {pipeline_mode = #tpu.pipeline_mode<synchronous>, transform_indices = @transform_7, window_bounds = array<i64: 32, 32>}, {pipeline_mode = #tpu.pipeline_mode<synchronous>, transform_indices = @transform_8, window_bounds = array<i64: 1, 32>}, {pipeline_mode = #tpu.pipeline_mode<synchronous>, transform_indices = @transform_9, window_bounds = array<i64: 1, 32>}, {pipeline_mode = #tpu.pipeline_mode<synchronous>, transform_indices = @transform_10, window_bounds = array<i64: 1, 32>}, {transform_indices = @transform_11, window_bounds = array<i64: 2, 8, 32>}]} {
    %c0 = arith.constant 0 : index
    %c0_0 = arith.constant 0 : index
    %c0_1 = arith.constant 0 : index
    %0 = vector.load %arg1[%c0, %c0_0, %c0_1] : memref<2x8x32xf32, #tpu.memory_space<vmem>>, vector<2x8x32xf32>
    %1 = vector.shape_cast %0 : vector<2x8x32xf32> to vector<16x32xf32>
    %c0_2 = arith.constant 0 : index
    %c0_3 = arith.constant 0 : index
    %c0_4 = arith.constant 0 : index
    %2 = vector.load %arg2[%c0_2, %c0_3, %c0_4] : memref<2x8x32xf32, #tpu.memory_space<vmem>>, vector<2x8x32xf32>
    %3 = vector.shape_cast %2 : vector<2x8x32xf32> to vector<16x32xf32>
    %c0_5 = arith.constant 0 : index
    %c0_6 = arith.constant 0 : index
    %4 = vector.load %arg4[%c0_5, %c0_6] : memref<32x32xf32, #tpu.memory_space<vmem>>, vector<32x32xf32>
    %cst = arith.constant dense<0.000000e+00> : vector<16x32xf32>
    %5 = tpu.matmul %1, %4, %cst {dimension_numbers = #tpu.dot_dimension_numbers<[1], [0], [0], [1], [0, 0, 1, 1], [], []>} : vector<16x32xf32>, vector<32x32xf32>, vector<16x32xf32> -> vector<16x32xf32>
    %c0_7 = arith.constant 0 : index
    %c0_8 = arith.constant 0 : index
    %6 = vector.load %arg5[%c0_7, %c0_8] : memref<1x32xf32, #tpu.memory_space<vmem>>, vector<1x32xf32>
    %7 = vector.broadcast %6 : vector<1x32xf32> to vector<16x32xf32>
    %8 = arith.addf %5, %7 : vector<16x32xf32>
    %c0_9 = arith.constant 0 : index
    %c0_10 = arith.constant 0 : index
    %9 = vector.load %arg6[%c0_9, %c0_10] : memref<32x64xf32, #tpu.memory_space<vmem>>, vector<32x64xf32>
    %cst_11 = arith.constant dense<0.000000e+00> : vector<16x64xf32>
    %10 = tpu.matmul %3, %9, %cst_11 {dimension_numbers = #tpu.dot_dimension_numbers<[1], [0], [0], [1], [0, 0, 1, 1], [], []>} : vector<16x32xf32>, vector<32x64xf32>, vector<16x64xf32> -> vector<16x64xf32>
    %c0_12 = arith.constant 0 : index
    %c0_13 = arith.constant 0 : index
    %11 = vector.load %arg7[%c0_12, %c0_13] : memref<1x64xf32, #tpu.memory_space<vmem>>, vector<1x64xf32>
    %12 = vector.broadcast %11 : vector<1x64xf32> to vector<16x64xf32>
    %13 = arith.addf %10, %12 : vector<16x64xf32>
    %cst_14 = arith.constant 0.353553385 : f32
    %14 = vector.broadcast %cst_14 : f32 to vector<16x32xf32>
    %15 = arith.mulf %8, %14 : vector<16x32xf32>
    %16 = vector.extract_strided_slice %13 {offsets = [0, 0], sizes = [16, 32], strides = [1, 1]} : vector<16x64xf32> to vector<16x32xf32>
    %17 = vector.extract_strided_slice %13 {offsets = [0, 32], sizes = [16, 32], strides = [1, 1]} : vector<16x64xf32> to vector<16x32xf32>
    %c0_15 = arith.constant 0 : index
    %c0_16 = arith.constant 0 : index
    %c0_17 = arith.constant 0 : index
    %c0_18 = arith.constant 0 : index
    %18 = vector.load %arg3[%c0_15, %c0_16, %c0_17, %c0_18] : memref<2x1x1x8xi32, #tpu.memory_space<vmem>>, vector<1x1x1x8xi32>
    %19 = vector.shape_cast %18 : vector<1x1x1x8xi32> to vector<1x8xi32>
    %20 = vector.shape_cast %19 : vector<1x8xi32> to vector<1x8xi32>
    %21 = vector.broadcast %20 : vector<1x8xi32> to vector<8x8xi32>
    %c0_i32 = arith.constant 0 : i32
    %22 = vector.broadcast %c0_i32 : i32 to vector<8x8xi32>
    %23 = arith.cmpi sgt, %21, %22 : vector<8x8xi32>
    %24 = vector.extract_strided_slice %15 {offsets = [0, 0], sizes = [8, 8], strides = [1, 1]} : vector<16x32xf32> to vector<8x8xf32>
    %25 = vector.extract_strided_slice %16 {offsets = [0, 0], sizes = [8, 8], strides = [1, 1]} : vector<16x32xf32> to vector<8x8xf32>
    %26 = vector.extract_strided_slice %17 {offsets = [0, 0], sizes = [8, 8], strides = [1, 1]} : vector<16x32xf32> to vector<8x8xf32>
    %cst_19 = arith.constant dense<0.000000e+00> : vector<8x8xf32>
    %27 = tpu.matmul %24, %25, %cst_19 {dimension_numbers = #tpu.dot_dimension_numbers<[1], [1], [0], [0], [0, 0, 1, 0], [], []>} : vector<8x8xf32>, vector<8x8xf32>, vector<8x8xf32> -> vector<8x8xf32>
    %cst_20 = arith.constant -1.000000e+09 : f32
    %28 = vector.broadcast %cst_20 : f32 to vector<8x8xf32>
    %29 = arith.select %23, %28, %27 : vector<8x8xi1>, vector<8x8xf32>
    %cst_21 = arith.constant dense<0xFF800000> : vector<8xf32>
    %30 = vector.multi_reduction <maximumf>, %29, %cst_21 [1] : vector<8x8xf32> to vector<8xf32>
    %31 = vector.shape_cast %30 : vector<8xf32> to vector<8x1xf32>
    %32 = vector.broadcast %31 : vector<8x1xf32> to vector<8x8xf32>
    %33 = arith.subf %29, %32 : vector<8x8xf32>
    %34 = math.exp %33 : vector<8x8xf32>
    %cst_22 = arith.constant dense<0.000000e+00> : vector<8xf32>
    %35 = vector.multi_reduction <add>, %34, %cst_22 [1] : vector<8x8xf32> to vector<8xf32>
    %36 = vector.shape_cast %35 : vector<8xf32> to vector<8x1xf32>
    %37 = tpu.reciprocal %36 {approx = true} : vector<8x1xf32> -> vector<8x1xf32>
    %38 = vector.broadcast %37 : vector<8x1xf32> to vector<8x8xf32>
    %39 = arith.mulf %34, %38 : vector<8x8xf32>
    %cst_23 = arith.constant dense<0.000000e+00> : vector<8x8xf32>
    %40 = tpu.matmul %39, %26, %cst_23 {dimension_numbers = #tpu.dot_dimension_numbers<[1], [0], [0], [1], [0, 0, 1, 1], [], []>} : vector<8x8xf32>, vector<8x8xf32>, vector<8x8xf32> -> vector<8x8xf32>
    %c0_24 = arith.constant 0 : index
    %c0_25 = arith.constant 0 : index
    %41 = vector.load %arg13[%c0_24, %c0_25] : memref<16x32xf32, #tpu.memory_space<vmem>>, vector<8x8xf32>
    tpu.vector_store %arg13[%c0_24, %c0_25], %40 {strides = array<i32>} : memref<16x32xf32, #tpu.memory_space<vmem>>, vector<8x8xf32>,
    %42 = vector.extract_strided_slice %15 {offsets = [0, 8], sizes = [8, 8], strides = [1, 1]} : vector<16x32xf32> to vector<8x8xf32>
    %43 = vector.extract_strided_slice %16 {offsets = [0, 8], sizes = [8, 8], strides = [1, 1]} : vector<16x32xf32> to vector<8x8xf32>
    %44 = vector.extract_strided_slice %17 {offsets = [0, 8], sizes = [8, 8], strides = [1, 1]} : vector<16x32xf32> to vector<8x8xf32>
    %cst_26 = arith.constant dense<0.000000e+00> : vector<8x8xf32>
    %45 = tpu.matmul %42, %43, %cst_26 {dimension_numbers = #tpu.dot_dimension_numbers<[1], [1], [0], [0], [0, 0, 1, 0], [], []>} : vector<8x8xf32>, vector<8x8xf32>, vector<8x8xf32> -> vector<8x8xf32>
    %cst_27 = arith.constant -1.000000e+09 : f32
    %46 = vector.broadcast %cst_27 : f32 to vector<8x8xf32>
    %47 = arith.select %23, %46, %45 : vector<8x8xi1>, vector<8x8xf32>
    %cst_28 = arith.constant dense<0xFF800000> : vector<8xf32>
    %48 = vector.multi_reduction <maximumf>, %47, %cst_28 [1] : vector<8x8xf32> to vector<8xf32>
    %49 = vector.shape_cast %48 : vector<8xf32> to vector<8x1xf32>
    %50 = vector.broadcast %49 : vector<8x1xf32> to vector<8x8xf32>
    %51 = arith.subf %47, %50 : vector<8x8xf32>
    %52 = math.exp %51 : vector<8x8xf32>
    %cst_29 = arith.constant dense<0.000000e+00> : vector<8xf32>
    %53 = vector.multi_reduction <add>, %52, %cst_29 [1] : vector<8x8xf32> to vector<8xf32>
    %54 = vector.shape_cast %53 : vector<8xf32> to vector<8x1xf32>
    %55 = tpu.reciprocal %54 {approx = true} : vector<8x1xf32> -> vector<8x1xf32>
    %56 = vector.broadcast %55 : vector<8x1xf32> to vector<8x8xf32>
    %57 = arith.mulf %52, %56 : vector<8x8xf32>
    %cst_30 = arith.constant dense<0.000000e+00> : vector<8x8xf32>
    %58 = tpu.matmul %57, %44, %cst_30 {dimension_numbers = #tpu.dot_dimension_numbers<[1], [0], [0], [1], [0, 0, 1, 1], [], []>} : vector<8x8xf32>, vector<8x8xf32>, vector<8x8xf32> -> vector<8x8xf32>
    %c0_31 = arith.constant 0 : index
    %c8 = arith.constant 8 : index
    %59 = vector.load %arg13[%c0_31, %c8] : memref<16x32xf32, #tpu.memory_space<vmem>>, vector<8x8xf32>
    tpu.vector_store %arg13[%c0_31, %c8], %58 {strides = array<i32>} : memref<16x32xf32, #tpu.memory_space<vmem>>, vector<8x8xf32>,
    %60 = vector.extract_strided_slice %15 {offsets = [0, 16], sizes = [8, 8], strides = [1, 1]} : vector<16x32xf32> to vector<8x8xf32>
    %61 = vector.extract_strided_slice %16 {offsets = [0, 16], sizes = [8, 8], strides = [1, 1]} : vector<16x32xf32> to vector<8x8xf32>
    %62 = vector.extract_strided_slice %17 {offsets = [0, 16], sizes = [8, 8], strides = [1, 1]} : vector<16x32xf32> to vector<8x8xf32>
    %cst_32 = arith.constant dense<0.000000e+00> : vector<8x8xf32>
    %63 = tpu.matmul %60, %61, %cst_32 {dimension_numbers = #tpu.dot_dimension_numbers<[1], [1], [0], [0], [0, 0, 1, 0], [], []>} : vector<8x8xf32>, vector<8x8xf32>, vector<8x8xf32> -> vector<8x8xf32>
    %cst_33 = arith.constant -1.000000e+09 : f32
    %64 = vector.broadcast %cst_33 : f32 to vector<8x8xf32>
    %65 = arith.select %23, %64, %63 : vector<8x8xi1>, vector<8x8xf32>
    %cst_34 = arith.constant dense<0xFF800000> : vector<8xf32>
    %66 = vector.multi_reduction <maximumf>, %65, %cst_34 [1] : vector<8x8xf32> to vector<8xf32>
    %67 = vector.shape_cast %66 : vector<8xf32> to vector<8x1xf32>
    %68 = vector.broadcast %67 : vector<8x1xf32> to vector<8x8xf32>
    %69 = arith.subf %65, %68 : vector<8x8xf32>
    %70 = math.exp %69 : vector<8x8xf32>
    %cst_35 = arith.constant dense<0.000000e+00> : vector<8xf32>
    %71 = vector.multi_reduction <add>, %70, %cst_35 [1] : vector<8x8xf32> to vector<8xf32>
    %72 = vector.shape_cast %71 : vector<8xf32> to vector<8x1xf32>
    %73 = tpu.reciprocal %72 {approx = true} : vector<8x1xf32> -> vector<8x1xf32>
    %74 = vector.broadcast %73 : vector<8x1xf32> to vector<8x8xf32>
    %75 = arith.mulf %70, %74 : vector<8x8xf32>
    %cst_36 = arith.constant dense<0.000000e+00> : vector<8x8xf32>
    %76 = tpu.matmul %75, %62, %cst_36 {dimension_numbers = #tpu.dot_dimension_numbers<[1], [0], [0], [1], [0, 0, 1, 1], [], []>} : vector<8x8xf32>, vector<8x8xf32>, vector<8x8xf32> -> vector<8x8xf32>
    %c0_37 = arith.constant 0 : index
    %c16 = arith.constant 16 : index
    %77 = vector.load %arg13[%c0_37, %c16] : memref<16x32xf32, #tpu.memory_space<vmem>>, vector<8x8xf32>
    tpu.vector_store %arg13[%c0_37, %c16], %76 {strides = array<i32>} : memref<16x32xf32, #tpu.memory_space<vmem>>, vector<8x8xf32>,
    %78 = vector.extract_strided_slice %15 {offsets = [0, 24], sizes = [8, 8], strides = [1, 1]} : vector<16x32xf32> to vector<8x8xf32>
    %79 = vector.extract_strided_slice %16 {offsets = [0, 24], sizes = [8, 8], strides = [1, 1]} : vector<16x32xf32> to vector<8x8xf32>
    %80 = vector.extract_strided_slice %17 {offsets = [0, 24], sizes = [8, 8], strides = [1, 1]} : vector<16x32xf32> to vector<8x8xf32>
    %cst_38 = arith.constant dense<0.000000e+00> : vector<8x8xf32>
    %81 = tpu.matmul %78, %79, %cst_38 {dimension_numbers = #tpu.dot_dimension_numbers<[1], [1], [0], [0], [0, 0, 1, 0], [], []>} : vector<8x8xf32>, vector<8x8xf32>, vector<8x8xf32> -> vector<8x8xf32>
    %cst_39 = arith.constant -1.000000e+09 : f32
    %82 = vector.broadcast %cst_39 : f32 to vector<8x8xf32>
    %83 = arith.select %23, %82, %81 : vector<8x8xi1>, vector<8x8xf32>
    %cst_40 = arith.constant dense<0xFF800000> : vector<8xf32>
    %84 = vector.multi_reduction <maximumf>, %83, %cst_40 [1] : vector<8x8xf32> to vector<8xf32>
    %85 = vector.shape_cast %84 : vector<8xf32> to vector<8x1xf32>
    %86 = vector.broadcast %85 : vector<8x1xf32> to vector<8x8xf32>
    %87 = arith.subf %83, %86 : vector<8x8xf32>
    %88 = math.exp %87 : vector<8x8xf32>
    %cst_41 = arith.constant dense<0.000000e+00> : vector<8xf32>
    %89 = vector.multi_reduction <add>, %88, %cst_41 [1] : vector<8x8xf32> to vector<8xf32>
    %90 = vector.shape_cast %89 : vector<8xf32> to vector<8x1xf32>
    %91 = tpu.reciprocal %90 {approx = true} : vector<8x1xf32> -> vector<8x1xf32>
    %92 = vector.broadcast %91 : vector<8x1xf32> to vector<8x8xf32>
    %93 = arith.mulf %88, %92 : vector<8x8xf32>
    %cst_42 = arith.constant dense<0.000000e+00> : vector<8x8xf32>
    %94 = tpu.matmul %93, %80, %cst_42 {dimension_numbers = #tpu.dot_dimension_numbers<[1], [0], [0], [1], [0, 0, 1, 1], [], []>} : vector<8x8xf32>, vector<8x8xf32>, vector<8x8xf32> -> vector<8x8xf32>
    %c0_43 = arith.constant 0 : index
    %c24 = arith.constant 24 : index
    %95 = vector.load %arg13[%c0_43, %c24] : memref<16x32xf32, #tpu.memory_space<vmem>>, vector<8x8xf32>
    tpu.vector_store %arg13[%c0_43, %c24], %94 {strides = array<i32>} : memref<16x32xf32, #tpu.memory_space<vmem>>, vector<8x8xf32>,
    %c1 = arith.constant 1 : index
    %c0_44 = arith.constant 0 : index
    %c0_45 = arith.constant 0 : index
    %c0_46 = arith.constant 0 : index
    %96 = vector.load %arg3[%c1, %c0_44, %c0_45, %c0_46] : memref<2x1x1x8xi32, #tpu.memory_space<vmem>>, vector<1x1x1x8xi32>
    %97 = vector.shape_cast %96 : vector<1x1x1x8xi32> to vector<1x8xi32>
    %98 = vector.shape_cast %97 : vector<1x8xi32> to vector<1x8xi32>
    %99 = vector.broadcast %98 : vector<1x8xi32> to vector<8x8xi32>
    %c0_i32_47 = arith.constant 0 : i32
    %100 = vector.broadcast %c0_i32_47 : i32 to vector<8x8xi32>
    %101 = arith.cmpi sgt, %99, %100 : vector<8x8xi32>
    %102 = vector.extract_strided_slice %15 {offsets = [8, 0], sizes = [8, 8], strides = [1, 1]} : vector<16x32xf32> to vector<8x8xf32>
    %103 = vector.extract_strided_slice %16 {offsets = [8, 0], sizes = [8, 8], strides = [1, 1]} : vector<16x32xf32> to vector<8x8xf32>
    %104 = vector.extract_strided_slice %17 {offsets = [8, 0], sizes = [8, 8], strides = [1, 1]} : vector<16x32xf32> to vector<8x8xf32>
    %cst_48 = arith.constant dense<0.000000e+00> : vector<8x8xf32>
    %105 = tpu.matmul %102, %103, %cst_48 {dimension_numbers = #tpu.dot_dimension_numbers<[1], [1], [0], [0], [0, 0, 1, 0], [], []>} : vector<8x8xf32>, vector<8x8xf32>, vector<8x8xf32> -> vector<8x8xf32>
    %cst_49 = arith.constant -1.000000e+09 : f32
    %106 = vector.broadcast %cst_49 : f32 to vector<8x8xf32>
    %107 = arith.select %101, %106, %105 : vector<8x8xi1>, vector<8x8xf32>
    %cst_50 = arith.constant dense<0xFF800000> : vector<8xf32>
    %108 = vector.multi_reduction <maximumf>, %107, %cst_50 [1] : vector<8x8xf32> to vector<8xf32>
    %109 = vector.shape_cast %108 : vector<8xf32> to vector<8x1xf32>
    %110 = vector.broadcast %109 : vector<8x1xf32> to vector<8x8xf32>
    %111 = arith.subf %107, %110 : vector<8x8xf32>
    %112 = math.exp %111 : vector<8x8xf32>
    %cst_51 = arith.constant dense<0.000000e+00> : vector<8xf32>
    %113 = vector.multi_reduction <add>, %112, %cst_51 [1] : vector<8x8xf32> to vector<8xf32>
    %114 = vector.shape_cast %113 : vector<8xf32> to vector<8x1xf32>
    %115 = tpu.reciprocal %114 {approx = true} : vector<8x1xf32> -> vector<8x1xf32>
    %116 = vector.broadcast %115 : vector<8x1xf32> to vector<8x8xf32>
    %117 = arith.mulf %112, %116 : vector<8x8xf32>
    %cst_52 = arith.constant dense<0.000000e+00> : vector<8x8xf32>
    %118 = tpu.matmul %117, %104, %cst_52 {dimension_numbers = #tpu.dot_dimension_numbers<[1], [0], [0], [1], [0, 0, 1, 1], [], []>} : vector<8x8xf32>, vector<8x8xf32>, vector<8x8xf32> -> vector<8x8xf32>
    %c8_53 = arith.constant 8 : index
    %c0_54 = arith.constant 0 : index
    %119 = vector.load %arg13[%c8_53, %c0_54] : memref<16x32xf32, #tpu.memory_space<vmem>>, vector<8x8xf32>
    tpu.vector_store %arg13[%c8_53, %c0_54], %118 {strides = array<i32>} : memref<16x32xf32, #tpu.memory_space<vmem>>, vector<8x8xf32>,
    %120 = vector.extract_strided_slice %15 {offsets = [8, 8], sizes = [8, 8], strides = [1, 1]} : vector<16x32xf32> to vector<8x8xf32>
    %121 = vector.extract_strided_slice %16 {offsets = [8, 8], sizes = [8, 8], strides = [1, 1]} : vector<16x32xf32> to vector<8x8xf32>
    %122 = vector.extract_strided_slice %17 {offsets = [8, 8], sizes = [8, 8], strides = [1, 1]} : vector<16x32xf32> to vector<8x8xf32>
    %cst_55 = arith.constant dense<0.000000e+00> : vector<8x8xf32>
    %123 = tpu.matmul %120, %121, %cst_55 {dimension_numbers = #tpu.dot_dimension_numbers<[1], [1], [0], [0], [0, 0, 1, 0], [], []>} : vector<8x8xf32>, vector<8x8xf32>, vector<8x8xf32> -> vector<8x8xf32>
    %cst_56 = arith.constant -1.000000e+09 : f32
    %124 = vector.broadcast %cst_56 : f32 to vector<8x8xf32>
    %125 = arith.select %101, %124, %123 : vector<8x8xi1>, vector<8x8xf32>
    %cst_57 = arith.constant dense<0xFF800000> : vector<8xf32>
    %126 = vector.multi_reduction <maximumf>, %125, %cst_57 [1] : vector<8x8xf32> to vector<8xf32>
    %127 = vector.shape_cast %126 : vector<8xf32> to vector<8x1xf32>
    %128 = vector.broadcast %127 : vector<8x1xf32> to vector<8x8xf32>
    %129 = arith.subf %125, %128 : vector<8x8xf32>
    %130 = math.exp %129 : vector<8x8xf32>
    %cst_58 = arith.constant dense<0.000000e+00> : vector<8xf32>
    %131 = vector.multi_reduction <add>, %130, %cst_58 [1] : vector<8x8xf32> to vector<8xf32>
    %132 = vector.shape_cast %131 : vector<8xf32> to vector<8x1xf32>
    %133 = tpu.reciprocal %132 {approx = true} : vector<8x1xf32> -> vector<8x1xf32>
    %134 = vector.broadcast %133 : vector<8x1xf32> to vector<8x8xf32>
    %135 = arith.mulf %130, %134 : vector<8x8xf32>
    %cst_59 = arith.constant dense<0.000000e+00> : vector<8x8xf32>
    %136 = tpu.matmul %135, %122, %cst_59 {dimension_numbers = #tpu.dot_dimension_numbers<[1], [0], [0], [1], [0, 0, 1, 1], [], []>} : vector<8x8xf32>, vector<8x8xf32>, vector<8x8xf32> -> vector<8x8xf32>
    %c8_60 = arith.constant 8 : index
    %c8_61 = arith.constant 8 : index
    %137 = vector.load %arg13[%c8_60, %c8_61] : memref<16x32xf32, #tpu.memory_space<vmem>>, vector<8x8xf32>
    tpu.vector_store %arg13[%c8_60, %c8_61], %136 {strides = array<i32>} : memref<16x32xf32, #tpu.memory_space<vmem>>, vector<8x8xf32>,
    %138 = vector.extract_strided_slice %15 {offsets = [8, 16], sizes = [8, 8], strides = [1, 1]} : vector<16x32xf32> to vector<8x8xf32>
    %139 = vector.extract_strided_slice %16 {offsets = [8, 16], sizes = [8, 8], strides = [1, 1]} : vector<16x32xf32> to vector<8x8xf32>
    %140 = vector.extract_strided_slice %17 {offsets = [8, 16], sizes = [8, 8], strides = [1, 1]} : vector<16x32xf32> to vector<8x8xf32>
    %cst_62 = arith.constant dense<0.000000e+00> : vector<8x8xf32>
    %141 = tpu.matmul %138, %139, %cst_62 {dimension_numbers = #tpu.dot_dimension_numbers<[1], [1], [0], [0], [0, 0, 1, 0], [], []>} : vector<8x8xf32>, vector<8x8xf32>, vector<8x8xf32> -> vector<8x8xf32>
    %cst_63 = arith.constant -1.000000e+09 : f32
    %142 = vector.broadcast %cst_63 : f32 to vector<8x8xf32>
    %143 = arith.select %101, %142, %141 : vector<8x8xi1>, vector<8x8xf32>
    %cst_64 = arith.constant dense<0xFF800000> : vector<8xf32>
    %144 = vector.multi_reduction <maximumf>, %143, %cst_64 [1] : vector<8x8xf32> to vector<8xf32>
    %145 = vector.shape_cast %144 : vector<8xf32> to vector<8x1xf32>
    %146 = vector.broadcast %145 : vector<8x1xf32> to vector<8x8xf32>
    %147 = arith.subf %143, %146 : vector<8x8xf32>
    %148 = math.exp %147 : vector<8x8xf32>
    %cst_65 = arith.constant dense<0.000000e+00> : vector<8xf32>
    %149 = vector.multi_reduction <add>, %148, %cst_65 [1] : vector<8x8xf32> to vector<8xf32>
    %150 = vector.shape_cast %149 : vector<8xf32> to vector<8x1xf32>
    %151 = tpu.reciprocal %150 {approx = true} : vector<8x1xf32> -> vector<8x1xf32>
    %152 = vector.broadcast %151 : vector<8x1xf32> to vector<8x8xf32>
    %153 = arith.mulf %148, %152 : vector<8x8xf32>
    %cst_66 = arith.constant dense<0.000000e+00> : vector<8x8xf32>
    %154 = tpu.matmul %153, %140, %cst_66 {dimension_numbers = #tpu.dot_dimension_numbers<[1], [0], [0], [1], [0, 0, 1, 1], [], []>} : vector<8x8xf32>, vector<8x8xf32>, vector<8x8xf32> -> vector<8x8xf32>
    %c8_67 = arith.constant 8 : index
    %c16_68 = arith.constant 16 : index
    %155 = vector.load %arg13[%c8_67, %c16_68] : memref<16x32xf32, #tpu.memory_space<vmem>>, vector<8x8xf32>
    tpu.vector_store %arg13[%c8_67, %c16_68], %154 {strides = array<i32>} : memref<16x32xf32, #tpu.memory_space<vmem>>, vector<8x8xf32>,
    %156 = vector.extract_strided_slice %15 {offsets = [8, 24], sizes = [8, 8], strides = [1, 1]} : vector<16x32xf32> to vector<8x8xf32>
    %157 = vector.extract_strided_slice %16 {offsets = [8, 24], sizes = [8, 8], strides = [1, 1]} : vector<16x32xf32> to vector<8x8xf32>
    %158 = vector.extract_strided_slice %17 {offsets = [8, 24], sizes = [8, 8], strides = [1, 1]} : vector<16x32xf32> to vector<8x8xf32>
    %cst_69 = arith.constant dense<0.000000e+00> : vector<8x8xf32>
    %159 = tpu.matmul %156, %157, %cst_69 {dimension_numbers = #tpu.dot_dimension_numbers<[1], [1], [0], [0], [0, 0, 1, 0], [], []>} : vector<8x8xf32>, vector<8x8xf32>, vector<8x8xf32> -> vector<8x8xf32>
    %cst_70 = arith.constant -1.000000e+09 : f32
    %160 = vector.broadcast %cst_70 : f32 to vector<8x8xf32>
    %161 = arith.select %101, %160, %159 : vector<8x8xi1>, vector<8x8xf32>
    %cst_71 = arith.constant dense<0xFF800000> : vector<8xf32>
    %162 = vector.multi_reduction <maximumf>, %161, %cst_71 [1] : vector<8x8xf32> to vector<8xf32>
    %163 = vector.shape_cast %162 : vector<8xf32> to vector<8x1xf32>
    %164 = vector.broadcast %163 : vector<8x1xf32> to vector<8x8xf32>
    %165 = arith.subf %161, %164 : vector<8x8xf32>
    %166 = math.exp %165 : vector<8x8xf32>
    %cst_72 = arith.constant dense<0.000000e+00> : vector<8xf32>
    %167 = vector.multi_reduction <add>, %166, %cst_72 [1] : vector<8x8xf32> to vector<8xf32>
    %168 = vector.shape_cast %167 : vector<8xf32> to vector<8x1xf32>
    %169 = tpu.reciprocal %168 {approx = true} : vector<8x1xf32> -> vector<8x1xf32>
    %170 = vector.broadcast %169 : vector<8x1xf32> to vector<8x8xf32>
    %171 = arith.mulf %166, %170 : vector<8x8xf32>
    %cst_73 = arith.constant dense<0.000000e+00> : vector<8x8xf32>
    %172 = tpu.matmul %171, %158, %cst_73 {dimension_numbers = #tpu.dot_dimension_numbers<[1], [0], [0], [1], [0, 0, 1, 1], [], []>} : vector<8x8xf32>, vector<8x8xf32>, vector<8x8xf32> -> vector<8x8xf32>
    %c8_74 = arith.constant 8 : index
    %c24_75 = arith.constant 24 : index
    %173 = vector.load %arg13[%c8_74, %c24_75] : memref<16x32xf32, #tpu.memory_space<vmem>>, vector<8x8xf32>
    tpu.vector_store %arg13[%c8_74, %c24_75], %172 {strides = array<i32>} : memref<16x32xf32, #tpu.memory_space<vmem>>, vector<8x8xf32>,
    %c0_76 = arith.constant 0 : index
    %c0_77 = arith.constant 0 : index
    %174 = vector.load %arg13[%c0_76, %c0_77] : memref<16x32xf32, #tpu.memory_space<vmem>>, vector<16x32xf32>
    %c0_78 = arith.constant 0 : index
    %c0_79 = arith.constant 0 : index
    %175 = vector.load %arg8[%c0_78, %c0_79] : memref<32x32xf32, #tpu.memory_space<vmem>>, vector<32x32xf32>
    %cst_80 = arith.constant dense<0.000000e+00> : vector<16x32xf32>
    %176 = tpu.matmul %174, %175, %cst_80 {dimension_numbers = #tpu.dot_dimension_numbers<[1], [0], [0], [1], [0, 0, 1, 1], [], []>} : vector<16x32xf32>, vector<32x32xf32>, vector<16x32xf32> -> vector<16x32xf32>
    %c0_81 = arith.constant 0 : index
    %c0_82 = arith.constant 0 : index
    %177 = vector.load %arg9[%c0_81, %c0_82] : memref<1x32xf32, #tpu.memory_space<vmem>>, vector<1x32xf32>
    %178 = vector.broadcast %177 : vector<1x32xf32> to vector<16x32xf32>
    %179 = arith.addf %176, %178 : vector<16x32xf32>
    %180 = arith.addf %1, %179 : vector<16x32xf32>
    %c0_83 = arith.constant 0 : index
    %c0_84 = arith.constant 0 : index
    %181 = vector.load %arg10[%c0_83, %c0_84] : memref<1x32xf32, #tpu.memory_space<vmem>>, vector<1x32xf32>
    %c0_85 = arith.constant 0 : index
    %c0_86 = arith.constant 0 : index
    %182 = vector.load %arg11[%c0_85, %c0_86] : memref<1x32xf32, #tpu.memory_space<vmem>>, vector<1x32xf32>
    %cst_87 = arith.constant dense<0.000000e+00> : vector<16xf32>
    %183 = vector.multi_reduction <add>, %180, %cst_87 [1] : vector<16x32xf32> to vector<16xf32>
    %184 = vector.shape_cast %183 : vector<16xf32> to vector<16x1xf32>
    %cst_88 = arith.constant 3.200000e+01 : f32
    %185 = vector.broadcast %cst_88 : f32 to vector<16x1xf32>
    %186 = arith.divf %184, %185 : vector<16x1xf32>
    %187 = vector.broadcast %186 : vector<16x1xf32> to vector<16x32xf32>
    %188 = arith.subf %180, %187 : vector<16x32xf32>
    %189 = arith.mulf %188, %188 : vector<16x32xf32>
    %cst_89 = arith.constant dense<0.000000e+00> : vector<16xf32>
    %190 = vector.multi_reduction <add>, %189, %cst_89 [1] : vector<16x32xf32> to vector<16xf32>
    %191 = vector.shape_cast %190 : vector<16xf32> to vector<16x1xf32>
    %cst_90 = arith.constant 3.200000e+01 : f32
    %192 = vector.broadcast %cst_90 : f32 to vector<16x1xf32>
    %193 = arith.divf %191, %192 : vector<16x1xf32>
    %194 = vector.broadcast %186 : vector<16x1xf32> to vector<16x32xf32>
    %195 = arith.subf %180, %194 : vector<16x32xf32>
    %cst_91 = arith.constant 9.99999997E-7 : f32
    %196 = vector.broadcast %cst_91 : f32 to vector<16x1xf32>
    %197 = arith.addf %193, %196 : vector<16x1xf32>
    %198 = math.rsqrt %197 : vector<16x1xf32>
    %199 = vector.broadcast %198 : vector<16x1xf32> to vector<16x32xf32>
    %200 = arith.mulf %195, %199 : vector<16x32xf32>
    %201 = vector.broadcast %181 : vector<1x32xf32> to vector<16x32xf32>
    %202 = arith.mulf %200, %201 : vector<16x32xf32>
    %203 = vector.broadcast %182 : vector<1x32xf32> to vector<16x32xf32>
    %204 = arith.addf %202, %203 : vector<16x32xf32>
    %205 = vector.shape_cast %204 : vector<16x32xf32> to vector<2x8x32xf32>
    %c0_92 = arith.constant 0 : index
    %c0_93 = arith.constant 0 : index
    %c0_94 = arith.constant 0 : index
    %206 = vector.load %arg12[%c0_92, %c0_93, %c0_94] : memref<2x8x32xf32, #tpu.memory_space<vmem>>, vector<2x8x32xf32>
    tpu.vector_store %arg12[%c0_92, %c0_93, %c0_94], %205 {strides = array<i32>} : memref<2x8x32xf32, #tpu.memory_space<vmem>>, vector<2x8x32xf32>,
    return
  }
  func.func @transform_0(%arg0: i32) -> (i32, i32, i32) {
    %c0_i32 = arith.constant 0 : i32
    %c0_i32_0 = arith.constant 0 : i32
    %c0_i32_1 = arith.constant 0 : i32
    return %arg0, %c0_i32, %c0_i32_0 : i32, i32, i32
  }
  func.func @transform_1(%arg0: i32) -> (i32, i32, i32) {
    %c0_i32 = arith.constant 0 : i32
    %c0_i32_0 = arith.constant 0 : i32
    %c0_i32_1 = arith.constant 0 : i32
    return %arg0, %c0_i32, %c0_i32_0 : i32, i32, i32
  }
  func.func @transform_2(%arg0: i32) -> (i32, i32, i32, i32) {
    %c0_i32 = arith.constant 0 : i32
    %c0_i32_0 = arith.constant 0 : i32
    %c0_i32_1 = arith.constant 0 : i32
    %c0_i32_2 = arith.constant 0 : i32
    return %arg0, %c0_i32, %c0_i32_0, %c0_i32_1 : i32, i32, i32, i32
  }
  func.func @transform_3(%arg0: i32) -> (i32, i32) {
    %c0_i32 = arith.constant 0 : i32
    %c0_i32_0 = arith.constant 0 : i32
    %c0_i32_1 = arith.constant 0 : i32
    return %c0_i32, %c0_i32_0 : i32, i32
  }
  func.func @transform_4(%arg0: i32) -> (i32, i32) {
    %c0_i32 = arith.constant 0 : i32
    %c0_i32_0 = arith.constant 0 : i32
    %c0_i32_1 = arith.constant 0 : i32
    return %c0_i32, %c0_i32_0 : i32, i32
  }
  func.func @transform_5(%arg0: i32) -> (i32, i32) {
    %c0_i32 = arith.constant 0 : i32
    %c0_i32_0 = arith.constant 0 : i32
    %c0_i32_1 = arith.constant 0 : i32
    return %c0_i32, %c0_i32_0 : i32, i32
  }
  func.func @transform_6(%arg0: i32) -> (i32, i32) {
    %c0_i32 = arith.constant 0 : i32
    %c0_i32_0 = arith.constant 0 : i32
    %c0_i32_1 = arith.constant 0 : i32
    return %c0_i32, %c0_i32_0 : i32, i32
  }
  func.func @transform_7(%arg0: i32) -> (i32, i32) {
    %c0_i32 = arith.constant 0 : i32
    %c0_i32_0 = arith.constant 0 : i32
    %c0_i32_1 = arith.constant 0 : i32
    return %c0_i32, %c0_i32_0 : i32, i32
  }
  func.func @transform_8(%arg0: i32) -> (i32, i32) {
    %c0_i32 = arith.constant 0 : i32
    %c0_i32_0 = arith.constant 0 : i32
    %c0_i32_1 = arith.constant 0 : i32
    return %c0_i32, %c0_i32_0 : i32, i32
  }
  func.func @transform_9(%arg0: i32) -> (i32, i32) {
    %c0_i32 = arith.constant 0 : i32
    %c0_i32_0 = arith.constant 0 : i32
    %c0_i32_1 = arith.constant 0 : i32
    return %c0_i32, %c0_i32_0 : i32, i32
  }
  func.func @transform_10(%arg0: i32) -> (i32, i32) {
    %c0_i32 = arith.constant 0 : i32
    %c0_i32_0 = arith.constant 0 : i32
    %c0_i32_1 = arith.constant 0 : i32
    return %c0_i32, %c0_i32_0 : i32, i32
  }
  func.func @transform_11(%arg0: i32) -> (i32, i32, i32) {
    %c0_i32 = arith.constant 0 : i32
    %c0_i32_0 = arith.constant 0 : i32
    %c0_i32_1 = arith.constant 0 : i32
    return %arg0, %c0_i32, %c0_i32_0 : i32, i32, i32
  }
}

</mosaic_0001>

<bundles_post_ra>
// kernel: tpu_custom_call.1
= control target key start
LH: loop header
LB: loop body
LE: loop exit
PB: predicated region body
PF: predicated region fallthrough
CT: control target
= control target key end

     0   :  { %s3593_s0 = inlined_call_operand.hbm [shape: f32[4,8,32], index: 0, kind: input, shape index: {}]   ;;  %s3594_s1 = inlined_call_operand.hbm [shape: f32[4,8,32], index: 1, kind: input, shape index: {}]   ;;  %s3595_s2 = inlined_call_operand.hbm [shape: s32[4,1,1,8], index: 2, kind: input, shape index: {}]   ;;  %s3596_s3 = inlined_call_operand.hbm [shape: f32[32,32], index: 3, kind: input, shape index: {}]   ;;  %s3597_s4 = inlined_call_operand.vmem [shape: f32[1,32], index: 4, kind: input, shape index: {}]   ;;  %s3598_s5 = inlined_call_operand.hbm [shape: f32[32,64], index: 5, kind: input, shape index: {}]   ;;  %s3599_s6 = inlined_call_operand.vmem [shape: f32[1,64], index: 6, kind: input, shape index: {}]   ;;  %s3600_s7 = inlined_call_operand.hbm [shape: f32[32,32], index: 7, kind: input, shape index: {}]   ;;  %s3601_s8 = inlined_call_operand.vmem [shape: f32[1,32], index: 8, kind: input, shape index: {}]   ;;  %s3602_s9 = inlined_call_operand.vmem [shape: f32[1,32], index: 9, kind: input, shape index: {}]   ;;  %s3603_s10 = inlined_call_operand.vmem [shape: f32[1,32], index: 10, kind: input, shape index: {}]   ;;  %s3604_s11 = inlined_call_operand.hbm [shape: f32[4,8,32], index: 11, kind: output, shape index: {}]  }
   0x1   :  { %3625 = sst [smem:[#allocation26_spill]] %s3594_s1 }
   0x2   :  { %3626 = sst [smem:[#allocation27_spill]] %s3596_s3 }
   0x3   :  { %3627 = sst [smem:[#allocation28_spill]] %s3598_s5 }
   0x4   :  { %3628 = sst [smem:[#allocation29_spill]] %s3604_s11 }
   0x5   :  { %16 = vsyncpa [#allocation4], 0 }
   0x6   :  { %18 = vsyncpa [#allocation4 + $0x1], 0 }
   0x7   :  { %19 = vsyncpa [#allocation7], 0 }
   0x8   :  { %21 = vsyncpa [#allocation7 + $0x1], 0 }
   0x9   :  { %22 = vsyncpa [#allocation10], 0 }
   0xa   :  { %23 = vsyncpa [#allocation13], 0 }
   0xb   :  { %24 = vsyncpa [#allocation5], 0 }
   0xc   :  { %26 = vsyncpa [#allocation5 + $0x1], 0  ;;  %s3093_s17 = smov 0   ;;  %s3095_s18 = smov 0  }
   0xd   :  { %s3097_s19 = smov 0   ;;  %s3099_s20 = smov 0  }
   0xe LB: > { %3629 = sst [smem:[#allocation20_spill]] %s2995_s17  ;;  %s3114_s21 = sadd.s32 4294967295, %s3007_s20   ;;  %s3007_s20 = sphi %s3099_s20, %s3667_s20   ;;  %s3003_s19 = sphi %s3097_s19, %s3669_s19   ;;  %s2999_s18 = sphi %s3095_s18, %s3671_s18   ;;  %s2995_s17 = sphi %s3093_s17, %s3670_s17  }
   0xf   : > { %3630 = sst [smem:[#allocation21_spill]] %s3003_s19  ;;  %s2396_s22 = sadd.s32 4294967294, %s3007_s20  }
  0x10   : > { %s3118_s23 = sadd.s32 1, %s3007_s20   ;;  %s39_s24 = sadd.s32 1, %s3003_s19 }
  0x11   : > { %3631 = sst [smem:[#allocation22_spill]] %s3118_s23  ;;  %s36_s25 = ssub.s32 %s3007_s20, %s3118_s23 }
  0x12   : > { %p46_p0 = scmp.ne.s32.totalorder %s3003_s19, %s2999_s18  ;;  %p37_p1 = scmp.eq.s32.totalorder %s36_s25, 0 }
  0x13   : > { %p47_p2 = scmp.eq.s32.totalorder %s3007_s20, 0  ;;  %p52_p3 = scmp.ne.s32.totalorder %s2999_s18, %s2995_s17 }
  0x14   : > { %p3605_p4 = scmp.eq.s32.totalorder %s3114_s21, 0  ;;  %p296_p7 = scmp.eq.s32.totalorder %s3114_s21, 1 }
  0x15   : > { %s3130_s26 = scalar_select %p37_p1, %s3003_s19, %s39_s24  }
  0x16   : > { %p3132_p5 = por %p47_p2, %p46_p0  ;;  %p3138_p6 = por %p3605_p4, %p52_p3 }
  0x17   : > { %3632 = sst [smem:[#allocation23_spill]] %s3130_s26  ;;  %p302_p8 = scmp.eq.s32.totalorder %s2396_s22, 1 }
  0x18   : > { %s3634_s28 = scalar_select %p3138_p6, 1, 0 }
  0x19   : > { %p2397_p9 = scmp.ge.s32.totalorder %s3007_s20, 1  ;;  %p309_p10 = scmp.lt.s32.totalorder %s3007_s20, 3 }
  0x1a   : > { %p3145_p11 = por %p296_p7, %p46_p0  ;;  %p3149_p12 = por %p302_p8, %p52_p3 }
  0x1b   : > { %p3153_p13 = pnand %p2397_p9, %p309_p10  ;;  %s3009_s13 = smov [#allocation9]  }
  0x1c   : > { %s3635_s29 = scalar_select %p3145_p11, 1, 0 }
  0x1d   : > { %s3637_s30 = scalar_select %p3149_p12, 1, 0 }
  0x1e   : > { %3636 = sst [smem:[#allocation24_spill]] %s3635_s29  ;;  %p2649_p1 = pneg %p3153_p13 }
  0x1f   : > { %3638 = sst [smem:[#allocation25_spill]] %s3637_s30  ;;  %s321_s14 = sshll.u32 %s3009_s13, 4  ;;  %s322_s14 = int_to_ptr.vmem [resolvable:$true] %s321_s14 }
  0x20   : > { %s3639_s12 = scalar_select %p3153_p13, 1, 0 }
  0x21   : > { %p3161_p2 = pnand %p2649_p1, %p3605_p4  ;;  %p2676_p3 = scmp.lt.s32.totalorder %s3007_s20, 2 }
  0x22   : > { %s3168_s16 = sand.u32 1, %s3003_s19   ;;  %s2780_s24 = scalar_lea.vmem %s322_s14, 512 }
  0x23   : > { %s3640_s15 = scalar_select %p3161_p2, 1, 0 }
  0x24   : > { %p3620_p7 = pneg %p3161_p2  ;;  %p2781_p8 = scmp.ne.s32.totalorder %s322_s14, %s2780_s24 }
  0x25   : > { %p2788_p1 = scmp.lt.s32.totalorder %s322_s14, %s322_s14  ;;  %p2789_p4 = scmp.lt.s32.totalorder %s2780_s24, %s2780_s24 }
  0x26   : > { %p2783_p9 = pnand %p2781_p8, %p3620_p7 }
  0x27   : > { %p2790_p12 = por %p2789_p4, %p2788_p1 }
  0x28   : > { %p2784_p10 = pneg %p2783_p9 }
  0x2a   : > { %p2791_p11 = pnand %p2790_p12, %p2784_p10 }
  0x2c   : > { %2794 = shalt.err (!%p2791_p11)
}
  0x2d   : > { %s3615_s25 = smov 128   ;;  %s3618_s13 = smov 8  }
  0x2e   : > { %s3641_s3 = sld [smem:[#allocation27_spill]]  ;;  %s3617_s24 = sshll.u32 %s3007_s20, 8 }
  0x2f   : > { %p3189_p4 = pnand %p2676_p3, %p3132_p5  ;;  %s397_s23 = sand.u32 1, %s3007_s20  }
  0x30   : > { %s3643_s1 = sld [smem:[#allocation26_spill]]  ;;  %s3644_s29 = sshll.u32 %s3168_s16, 4 }
  0x31   : > { %s401_s26 = scalar_lea.vmem [#allocation6], %s3644_s29  ;;  %s3205_s27 = scalar_lea.sflag [#allocation7], %s397_s23 }
  0x32   : > { %p3211_p11 = pneg %p3189_p4 }
  0x34   : > { %2652 = dma.hbm_to_vmem [thread:$0]  (!%p3161_p2), %s3641_s3, 512, %s322_s14, [#allocation10], %s3615_s25, %s3615_s25, %s3618_s13  }
  0x35   : > { %s408_s14 = sshll.u32 %s401_s26, 4  ;;  %s3203_s14 = int_to_ptr.vmem [resolvable:$true] %s408_s14 }
  0x36   : > { %s3199_s11 = scalar_lea.hbm %s3643_s1, %s3617_s24  ;;  %s2800_s29 = scalar_lea.hbm %s3643_s1, 512 }
  0x37   : > { %s2795_s22 = scalar_lea.hbm %s3199_s11, 256  ;;  %p2801_p8 = scmp.lt.s32.totalorder %s3199_s11, %s3643_s1 }
  0x38   : > { %p2796_p5 = scmp.ne.s32.totalorder %s3199_s11, %s2795_s22  ;;  %p2802_p9 = scmp.lt.s32.totalorder %s2800_s29, %s2795_s22 }
  0x3a   : > { %p2798_p12 = pnand %p3211_p11, %p2796_p5  ;;  %p2803_p10 = por %p2802_p9, %p2801_p8 }
  0x3c   : > { %p2799_p3 = pneg %p2798_p12 }
  0x3e   : > { %p2804_p1 = pnand %p2803_p10, %p2799_p3 }
  0x40   : > { %2807 = shalt.err (!%p2804_p1)
}
  0x41   : > { %s2808_s23 = scalar_lea.vmem %s3203_s14, 256  ;;  %s3012_s13 = smov [#allocation6]  }
  0x42   : > { %p2809_p0 = scmp.ne.s32.totalorder %s3203_s14, %s2808_s23  ;;  %s2813_s17 = sshll.u32 %s3012_s13, 4  ;;  %s2814_s17 = int_to_ptr.vmem [resolvable:$false] %s2813_s17 }
  0x43   : > { %s2815_s30 = scalar_lea.vmem %s2814_s17, 512  ;;  %p2816_p7 = scmp.lt.s32.totalorder %s3203_s14, %s2814_s17 }
  0x44   : > { %p2811_p5 = pnand %p2809_p0, %p3211_p11  ;;  %p2817_p6 = scmp.lt.s32.totalorder %s2815_s30, %s2808_s23 }
  0x46   : > { %p2812_p12 = pneg %p2811_p5  ;;  %p2818_p13 = por %p2817_p6, %p2816_p7 }
  0x48   : > { %p2819_p2 = pnand %p2818_p13, %p2812_p12 }
  0x4a   : > { %2822 = shalt.err (!%p2819_p2)
}
  0x4b   : > { %s3646_s24 = smov 8   ;;  %s3647_s22 = smov 128  }
  0x4c   : > { %2665 = dma.hbm_to_vmem [thread:$0]  (!%p3189_p4), %s3199_s11, 256, %s3203_s14, %s3205_s27, %s3647_s22, %s3647_s22, %s3646_s24  }
  0x4d   : > { %s3013_s29 = smov [#allocation11]   ;;  %s3014_s13 = smov [#allocation12]  }
  0x4e   : > { %s337_s26 = sshll.u32 %s3013_s29, 4  ;;  %s353_s1 = sshll.u32 %s3014_s13, 4  ;;  %s338_s26 = int_to_ptr.vmem [resolvable:$true] %s337_s26  ;;  %s354_s1 = int_to_ptr.vmem [resolvable:$true] %s353_s1 }
  0x4f   : > { %s2834_s17 = scalar_lea.vmem %s338_s26, 512  ;;  %p3648_p6 = scmp.ne.s32.totalorder %s3640_s15, 0 }
  0x50   : > { %p2835_p0 = scmp.ne.s32.totalorder %s338_s26, %s2834_s17  ;;  %p2842_p3 = scmp.lt.s32.totalorder %s338_s26, %s338_s26 }
  0x51   : > { %p3649_p13 = pneg %p3648_p6  ;;  %p2843_p8 = scmp.lt.s32.totalorder %s2834_s17, %s2834_s17 }
  0x53   : > { %p2837_p2 = pnand %p2835_p0, %p3649_p13  ;;  %p2844_p9 = por %p2843_p8, %p2842_p3 }
  0x55   : > { %p2838_p7 = pneg %p2837_p2 }
  0x57   : > { %p2845_p10 = pnand %p2844_p9, %p2838_p7 }
  0x59   : > { %2848 = shalt.err (!%p2845_p10)
}
  0x5a   : > { %s3650_s5 = sld [smem:[#allocation28_spill]]  ;;  %s2860_s23 = scalar_lea.vmem %s354_s1, 512 }
  0x5b   : > { %p2861_p1 = scmp.ne.s32.totalorder %s354_s1, %s2860_s23  ;;  %p3651_p5 = pmov %p3649_p13 }
  0x5c   : > { %p2868_p13 = scmp.lt.s32.totalorder %s354_s1, %s354_s1  ;;  %p2869_p2 = scmp.lt.s32.totalorder %s2860_s23, %s2860_s23 }
  0x5d   : > { %p2863_p12 = pnand %p2861_p1, %p3651_p5 }
  0x5e   : > { %p2870_p7 = por %p2869_p2, %p2868_p13 }
  0x5f   : > { %p2864_p0 = pneg %p2863_p12 }
  0x60   : > { %2655 = dma.hbm_to_vmem [thread:$0]  (!%p3648_p6), %s3650_s5, 512, %s338_s26, [#allocation10], %s3647_s22, %s3647_s22, %s3646_s24  }
  0x61   : > { %p2871_p3 = pnand %p2870_p7, %p2864_p0 }
  0x63   : > { %2874 = shalt.err (!%p2871_p3)
}
  0x64   : > { %2658 = dma.hbm_to_vmem [thread:$0]  (!%p3648_p6), %s3600_s7, 512, %s354_s1, [#allocation13], %s3647_s22, %s3647_s22, %s3646_s24  }
  0x65   : > { %s3652_s26 = sshll.u32 %s3007_s20, 8  ;;  %s3653_s14 = sshll.u32 %s3168_s16, 4 }
  0x66   : > { %s3264_s11 = scalar_lea.hbm %s3593_s0, %s3652_s26  ;;  %s380_s15 = scalar_lea.vmem [#allocation3], %s3653_s14 }
  0x67   : > { %s387_s23 = sshll.u32 %s380_s15, 4  ;;  %s2408_s3 = sshll.u32 %s3168_s16, 1  ;;  %s3269_s23 = int_to_ptr.vmem [resolvable:$true] %s387_s23 }
  0x68   : > { %s377_s30 = scalar_lea.sflag [#allocation4], %s3168_s16  ;;  %s2875_s29 = scalar_lea.hbm %s3264_s11, 256 }
  0x69   : > { %p2876_p8 = scmp.ne.s32.totalorder %s3264_s11, %s2875_s29  ;;  %s2880_s26 = scalar_lea.hbm %s3593_s0, 512 }
  0x6a   : > { %p2881_p10 = scmp.lt.s32.totalorder %s3264_s11, %s3593_s0  ;;  %p2882_p1 = scmp.lt.s32.totalorder %s2880_s26, %s2875_s29 }
  0x6b   : > { %p2878_p6 = pnand %p2876_p8, %p3211_p11 }
  0x6c   : > { %p2883_p5 = por %p2882_p1, %p2881_p10 }
  0x6d   : > { %p2879_p9 = pneg %p2878_p6 }
  0x6f   : > { %p2884_p12 = pnand %p2883_p5, %p2879_p9 }
  0x71   : > { %2887 = shalt.err (!%p2884_p12)
}
  0x72   : > { %s2888_s14 = scalar_lea.vmem %s3269_s23, 256  ;;  %s3015_s15 = smov [#allocation3]  }
  0x73   : > { %p2889_p0 = scmp.ne.s32.totalorder %s3269_s23, %s2888_s14  ;;  %s2893_s5 = sshll.u32 %s3015_s15, 4  ;;  %s2894_s5 = int_to_ptr.vmem [resolvable:$false] %s2893_s5 }
  0x74   : > { %s2895_s1 = scalar_lea.vmem %s2894_s5, 512  ;;  %p2896_p7 = scmp.lt.s32.totalorder %s3269_s23, %s2894_s5 }
  0x75   : > { %p2891_p13 = pnand %p2889_p0, %p3211_p11  ;;  %p2897_p3 = scmp.lt.s32.totalorder %s2895_s1, %s2888_s14 }
  0x77   : > { %p2892_p2 = pneg %p2891_p13  ;;  %p2898_p8 = por %p2897_p3, %p2896_p7 }
  0x79   : > { %p2899_p6 = pnand %p2898_p8, %p2892_p2 }
  0x7b   : > { %2902 = shalt.err (!%p2899_p6)
}
  0x7c   : > { %2662 = dma.hbm_to_vmem [thread:$0]  (!%p3189_p4), %s3264_s11, 256, %s3269_s23, %s377_s30, %s3647_s22, %s3647_s22, %s3646_s24  }
  0x7d   : > { %s2464_s29 = sshll.u32 %s3007_s20, 5  ;;  %s422_s26 = scalar_lea.vmem [#allocation8], %s2408_s3 }
  0x7e   : > { %s429_s13 = sshll.u32 %s422_s26, 4  ;;  %s3301_s15 = scalar_lea.hbm %s3595_s2, %s2464_s29  ;;  %s3303_s13 = int_to_ptr.vmem [resolvable:$true] %s429_s13 }
  0x7f   : > { %s2903_s5 = scalar_lea.hbm %s3301_s15, 32  ;;  %s2908_s3 = scalar_lea.hbm %s3595_s2, 64 }
  0x80   : > { %p2904_p9 = scmp.ne.s32.totalorder %s3301_s15, %s2903_s5  ;;  %p2909_p5 = scmp.lt.s32.totalorder %s3301_s15, %s3595_s2 }
  0x81   : > { %p2910_p12 = scmp.lt.s32.totalorder %s2908_s3, %s2903_s5 }
  0x82   : > { %p2906_p10 = pnand %p2904_p9, %p3211_p11 }
  0x83   : > { %p2911_p0 = por %p2910_p12, %p2909_p5 }
  0x84   : > { %p2907_p1 = pneg %p2906_p10 }
  0x86   : > { %p2912_p13 = pnand %p2911_p0, %p2907_p1 }
  0x88   : > { %2915 = shalt.err (!%p2912_p13)
}
  0x89   : > { %s2916_s23 = scalar_lea.vmem %s3303_s13, 32  ;;  %s3016_s30 = smov [#allocation8]  }
  0x8a   : > { %p2917_p2 = scmp.ne.s32.totalorder %s3303_s13, %s2916_s23  ;;  %s2921_s1 = sshll.u32 %s3016_s30, 4  ;;  %s2922_s1 = int_to_ptr.vmem [resolvable:$false] %s2921_s1 }
  0x8b   : > { %s2923_s29 = scalar_lea.vmem %s2922_s1, 64  ;;  %p2924_p8 = scmp.lt.s32.totalorder %s3303_s13, %s2922_s1 }
  0x8c   : > { %p2919_p7 = pnand %p2917_p2, %p3211_p11  ;;  %p2925_p6 = scmp.lt.s32.totalorder %s2923_s29, %s2916_s23 }
  0x8e   : > { %p2920_p3 = pneg %p2919_p7  ;;  %p2926_p9 = por %p2925_p6, %p2924_p8 }
  0x90   : > { %p2927_p10 = pnand %p2926_p9, %p2920_p3 }
  0x92   : > { %2930 = shalt.err (!%p2927_p10)
}
  0x93   : > { %s3017_s26 = smov 16   ;;  %s3018_s17 = smov 1  }
  0x94   : > { %2668 = dma.hbm_to_vmem [thread:$0]  (!%p3189_p4), %s3301_s15, 32, %s3303_s13, %s3205_s27, %s3017_s26, %s3017_s26, %s3018_s17  }
  0x95   : > { %p3654_p11 = scmp.ne.s32.totalorder %s3639_s12, 0 }
  0x96   : > { %s3329_s25 = sand.u32 (!%p3654_p11), 1, %s2999_s18   ;;  %p3655_p1 = scmp.ne.s32.totalorder (!%p3654_p11), %s3634_s28, 0 }
  0x97   : > { %441 = sbr.rel (%p3654_p11) target bundleno = 1910 (0x776), region = 64  ;;  %s3332_s14 = sshll.u32 (!%p3654_p11), %s3329_s25, 4 }
  0x98   : > { %s444_s5 = scalar_lea.sflag (!%p3654_p11), [#allocation4], %s3329_s25  ;;  %s447_s24 = scalar_lea.vmem (!%p3654_p11), [#allocation3], %s3332_s14 }
  0x9c   : > { %2974 = dma.done.wait (%p3655_p1), %s444_s5, 256  }
  0x9d   : > { %2976 = vsyncadd (%p3655_p1), %s444_s5, 4294967040  ;;  %s452_s19 = sand.u32 1, %s3114_s21   ;;  %s456_s27 = scalar_lea.vmem [#allocation6], %s3332_s14 }
  0x9e   : > { %s453_s12 = scalar_lea.sflag [#allocation7], %s452_s19 }
  0x9f   : > { %2978 = dma.done.wait (%p3655_p1), %s453_s12, 288  }
  0xa0   : > { %2980 = vsyncadd (%p3655_p1), %s453_s12, 4294967008  ;;  %s2414_s13 = sshll.u32 %s3329_s25, 1  ;;  %p3656_p4 = scmp.eq.s32.totalorder %s3114_s21, 0 }
  0xa1   : > { %s3347_s15 = scalar_lea.vmem [#allocation8], %s2414_s13 }
  0xa2   : > { %2982 = dma.done.wait (%p3656_p4), [#allocation10], 1024   ;;  %p3657_p5 = pmov %p3656_p4 }
  0xa3   : > { %p3658_p12 = pmov %p3656_p4 }
  0xa4   : > { %2984 = vsyncadd (%p3657_p5), [#allocation10], 4294966272 }
  0xa5   : > { %2986 = dma.done.wait (%p3658_p12), [#allocation13], 512   ;;  %p3659_p0 = pmov %p3656_p4 }
  0xa6   : > { %v537_v0 = vld [vmem:[#allocation9 + $0x18] sm:$0xff]  ;;  %v536_v2 = vld [vmem:[#allocation9 + $0x10] sm:$0xff]  ;;  %v535_v4 = vld [vmem:[#allocation9 + $0x8] sm:$0xff]  ;;  %vm545_vm0 = vcmask 261120   ;;  %v3019_v12 = vmov 0.0   ;;  %vm3020_vm1 = vmmov 0  }
  0xa7   : > { %2988 = vsyncadd (%p3659_p0), [#allocation13], 4294966784  ;;  %v630_v1 = vld [vmem:[#allocation11 + $0x18] sm:$0xff]  ;;  %2516 = vmatprep.subr.mxu0 %v537_v0  ;;  %v629_v3 = vld [vmem:[#allocation11 + $0x10] sm:$0xff]  ;;  %vm727_vm2 = vcmask 64512   ;;  %s3021_s11 = smov 112  }
  0xa8   : > { %2527 = vmatprep.subr.mxu1 %v630_v1  ;;  %2517 = vmatpush3.msra.mxu0 %v537_v0  ;;  %v628_v5 = vld [vmem:[#allocation11 + $0x8] sm:$0xff]  ;;  %v534_v6 = vld [vmem:[#allocation9] sm:$0xff]  ;;  %s3022_s23 = smov 120   ;;  %s3023_s30 = smov 104   ;;  %v2425_v38 = vld [vmem:[%s3347_s15] ss:$0 sm:$0xff] }
  0xa9   : > { %2528 = vmatpush3.msra.mxu1 %v630_v1  ;;  %2518 = vmatprep.subr.mxu0 %v536_v2  ;;  %v627_v7 = vld [vmem:[#allocation11] sm:$0xff]  ;;  %v2419_v14 = vld [vmem:[%s3597_s4] ss:$0 sm:$0xff]  ;;  %s3024_s1 = smov 88   ;;  %s3025_s29 = smov 96   ;;  %vm726_vm3 = vcmp.gt.s32.totalorder %v2425_v38, 0 }
  0xaa   : > { %2529 = vmatprep.subr.mxu1 %v629_v3  ;;  %2519 = vmatpush3.msra.mxu0 %v536_v2  ;;  %v3359_v8 = vld [vmem:[%s447_s24] sm:$0xff]  ;;  %v3365_v10 = vld [vmem:[%s447_s24 + $0x8] sm:$0xff]  ;;  %s3026_s26 = smov 72   ;;  %s3027_s17 = smov 80   ;;  %vm1063_vm5 = vcmask 130112   ;;  %vm1235_vm6 = vcmask 195712  }
  0xab   : > { %2530 = vmatpush3.msra.mxu1 %v629_v3  ;;  %2520 = vmatprep.subr.mxu0 %v535_v4  ;;  %v532_v9 = vld [vmem:[%s456_s27] sm:$0xff]  ;;  %v533_v11 = vld [vmem:[%s456_s27 + $0x8] sm:$0xff]  ;;  %s3028_s5 = smov 8   ;;  %s3029_s24 = smov 16   ;;  %vm1407_vm7 = vcmask 261312  }
  0xac   : > { %2531 = vmatprep.subr.mxu1 %v628_v5  ;;  %2521 = vmatpush3.msra.mxu0 %v535_v4  ;;  %v2422_v16 = vld [vmem:[%s3599_s6] ss:$0 sm:$0xff]  ;;  %v2439_v51 = vld [vmem:[%s3347_s15 + $0x1] ss:$0 sm:$0xff]  ;;  %s3030_s19 = smov 24   ;;  %s3660_s3 = sld [smem:[#allocation24_spill]] }
  0xad   : > { %2532 = vmatpush3.msra.mxu1 %v628_v5  ;;  %2522 = vmatprep.subr.mxu0 %v534_v6  ;;  %vm1415_vm4 = vcmp.gt.s32.totalorder %v2439_v51, 0  ;;  %s2465_s16 = sshll.u32 %s3114_s21, 8 }
  0xae   : > { %2533 = vmatprep.subr.mxu1 %v627_v7  ;;  %2523 = vmatpush3.msra.mxu0 %v534_v6 }
  0xaf   : > { %2524 = vmatprep.mubr.msk.f32.mxu0 %vm545_vm0, %v3359_v8  ;;  %2534 = vmatpush3.msra.mxu1 %v627_v7 }
  0xb0   : > { %2535 = vmatprep.mubr.msk.f32.mxu1 %vm545_vm0, %v532_v9  ;;  %2525 = vmatmul.mubr.msk.f32.vlgmr.msra.gmra.mxu0 %vm545_vm0, %v3365_v10 }
  0xb1   : > { %2536 = vmatmul.mubr.msk.f32.vlgmr.msra.gmra.mxu1 %vm545_vm0, %v533_v11  ;;  %2538 = vmatprep.subr.mxu1 %v3019_v12 }
  0xb2   : > { %2548 = vmatprep.subr.mxu0 %v3019_v12  ;;  %2540 = vmatprep.mubr.msk.f32.mxu1 %vm3020_vm1, %v3019_v12  ;;  %p3662_p2 = scmp.ne.s32.totalorder %s3660_s3, 0 }
  0xb3   : > { %2550 = vmatprep.mubr.msk.f32.mxu0 %vm3020_vm1, %v3019_v12 }
 0x170   : > { %v2526_v13 = vpop.f32.mrf.mxu0 }
 0x171   : > { %v2537_v15 = vpop.f32.mrf.mxu1  ;;  %v624_v22 = vadd.f32 %v2526_v13, %v2419_v14 }
 0x172   : > { %v618_v17 = vpop.f32.mrf.mxu0  ;;  %v3398_v24 = vadd.f32 %v2537_v15, %v2422_v16 }
 0x173   : > { %v710_v18 = vpop.f32.mrf.mxu1  ;;  %v619_v19 = vadd.f32 %v2419_v14, %v618_v17  ;;  %v720_v23 = vmul.f32 0.35355338, %v624_v22 }
 0x174   : > { %v3387_v20 = vadd.f32 %v2422_v16, %v710_v18 }
 0x175   : > { %v719_v21 = vmul.f32 0.35355338, %v619_v19 }
 0x176   : > { %1067 = vrot.lane.b32.xlu1 %v3387_v20, %s3021_s11  ;;  %895 = vrot.lane.b32.xlu0 %v3387_v20, %s3022_s23 }
 0x177   : > { %2539 = vmatpush3.xpose.msk.msra.mxu1 %vm727_vm2, %v3387_v20 }
 0x178   : > { %2543 = vmatprep.subr.mxu1 %v3019_v12 }
 0x17a   : > { %2541 = vmatmul.mubr.msk.f32.vlgmr.msra.gmra.mxu1 %vm727_vm2, %v719_v21  ;;  %1065 = vrot.lane.b32.xlu1 %v719_v21, %s3021_s11 }
 0x17b   : > { %893 = vrot.lane.b32.xlu0 %v719_v21, %s3022_s23  ;;  %2545 = vmatprep.mubr.msk.f32.mxu1 %vm3020_vm1, %v3019_v12 }
 0x17e   : > { %1237 = vrot.lane.b32.xlu1 %v719_v21, %s3023_s30 }
 0x17f   : > { %1239 = vrot.lane.b32.xlu0 %v3387_v20, %s3023_s30 }
 0x182   : > { %1581 = vrot.lane.b32.xlu1 %v720_v23, %s3022_s23 }
 0x183   : > { %1583 = vrot.lane.b32.xlu0 %v3398_v24, %s3022_s23 }
 0x186   : > { %1752 = vrot.lane.b32.xlu1 %v720_v23, %s3021_s11 }
 0x187   : > { %1754 = vrot.lane.b32.xlu0 %v3398_v24, %s3021_s11  ;;  %s525_s11 = scalar_lea.vmem [#allocation14], %s3332_s14  ;;  %s3031_s14 = smov [#allocation14]  }
 0x188   : > { %s2251_s23 = sshll.u32 %s525_s11, 4  ;;  %s3548_s23 = int_to_ptr.vmem [resolvable:$true] %s2251_s23 }
 0x189   : > { %s2931_s21 = scalar_lea.vmem %s3548_s23, 256 }
 0x18a   : > { %1923 = vrot.lane.b32.xlu1 %v720_v23, %s3023_s30  ;;  %p2932_p13 = scmp.ne.s32.totalorder %s3548_s23, %s2931_s21 }
 0x18b   : > { %1925 = vrot.lane.b32.xlu0 %v3398_v24, %s3023_s30 }
 0x18c   : > { %p2933_p7 = pnand %p2932_p13, %p3662_p2 }
 0x18e   : > { %983 = vrot.lane.b32.xlu1 %v3387_v20, %s3024_s1  ;;  %p2934_p3 = pneg %p2933_p7 }
 0x18f   : > { %816 = vrot.lane.b32.xlu0 %v3387_v20, %s3025_s29 }
 0x1e8   : > { %v1068_v25 = vpop.permute.xlu1 %1067  ;;  %v896_v26 = vpop.permute.xlu0 %895 }
 0x1e9   : > { %2549 = vmatpush3.xpose.msk.msra.mxu0 %vm727_vm2, %v896_v26 }
 0x1ea   : > { %2558 = vmatprep.subr.mxu0 %v3019_v12 }
 0x1ec   : > { %v1066_v27 = vpop.permute.xlu1 %1065 }
 0x1ed   : > { %v894_v28 = vpop.permute.xlu0 %893 }
 0x1ee   : > { %2551 = vmatmul.mubr.msk.f32.vlgmr.msra.gmra.mxu0 %vm727_vm2, %v894_v28 }
 0x1ef   : > { %2559 = vmatpush3.xpose.msk.msra.mxu0 %vm727_vm2, %v1068_v25  ;;  %2560 = vmatprep.mubr.msk.f32.mxu0 %vm3020_vm1, %v3019_v12 }
 0x1f0   : > { %2568 = vmatprep.subr.mxu0 %v3019_v12  ;;  %v1238_v30 = vpop.permute.xlu1 %1237 }
 0x1f1   : > { %v1240_v29 = vpop.permute.xlu0 %1239 }
 0x1f2   : > { %2561 = vmatmul.mubr.msk.f32.vlgmr.msra.gmra.mxu0 %vm727_vm2, %v1066_v27 }
 0x1f3   : > { %2569 = vmatpush3.xpose.msk.msra.mxu0 %vm727_vm2, %v1240_v29  ;;  %2570 = vmatprep.mubr.msk.f32.mxu0 %vm3020_vm1, %v3019_v12 }
 0x1f4   : > { %2578 = vmatprep.subr.mxu0 %v3019_v12  ;;  %v1582_v32 = vpop.permute.xlu1 %1581 }
 0x1f5   : > { %v1584_v31 = vpop.permute.xlu0 %1583 }
 0x1f6   : > { %2571 = vmatmul.mubr.msk.f32.vlgmr.msra.gmra.mxu0 %vm727_vm2, %v1238_v30 }
 0x1f7   : > { %2579 = vmatpush3.xpose.msk.msra.mxu0 %vm727_vm2, %v3398_v24  ;;  %2580 = vmatprep.mubr.msk.f32.mxu0 %vm3020_vm1, %v3019_v12 }
 0x1f8   : > { %2588 = vmatprep.subr.mxu0 %v3019_v12  ;;  %v1753_v35 = vpop.permute.xlu1 %1752 }
 0x1f9   : > { %v1755_v33 = vpop.permute.xlu0 %1754 }
 0x1fa   : > { %2581 = vmatmul.mubr.msk.f32.vlgmr.msra.gmra.mxu0 %vm727_vm2, %v720_v23 }
 0x1fb   : > { %2589 = vmatpush3.xpose.msk.msra.mxu0 %vm727_vm2, %v1584_v31  ;;  %2590 = vmatprep.mubr.msk.f32.mxu0 %vm3020_vm1, %v3019_v12 }
 0x1fc   : > { %2598 = vmatprep.subr.mxu0 %v3019_v12  ;;  %v1924_v37 = vpop.permute.xlu1 %1923 }
 0x1fd   : > { %v1926_v34 = vpop.permute.xlu0 %1925 }
 0x1fe   : > { %2591 = vmatmul.mubr.msk.f32.vlgmr.msra.gmra.mxu0 %vm727_vm2, %v1582_v32 }
 0x1ff   : > { %2599 = vmatpush3.xpose.msk.msra.mxu0 %vm727_vm2, %v1755_v33  ;;  %2600 = vmatprep.mubr.msk.f32.mxu0 %vm3020_vm1, %v3019_v12 }
 0x200   : > { %2608 = vmatprep.subr.mxu0 %v3019_v12  ;;  %v984_v16 = vpop.permute.xlu1 %983 }
 0x201   : > { %v817_v36 = vpop.permute.xlu0 %816 }
 0x202   : > { %2544 = vmatpush3.msra.mxu1 %v817_v36  ;;  %2601 = vmatmul.mubr.msk.f32.vlgmr.msra.gmra.mxu0 %vm727_vm2, %v1753_v35 }
 0x203   : > { %2609 = vmatpush3.xpose.msk.msra.mxu0 %vm727_vm2, %v1926_v34  ;;  %2610 = vmatprep.mubr.msk.f32.mxu0 %vm3020_vm1, %v3019_v12 }
 0x204   : > { %2553 = vmatprep.subr.mxu1 %v3019_v12 }
 0x206   : > { %2611 = vmatmul.mubr.msk.f32.vlgmr.msra.gmra.mxu0 %vm727_vm2, %v1924_v37 }
 0x23a   : > { %v800_v39 = vpop.f32.mrf.mxu1 }
 0x23b   : > { %v804_v40 = vsel %vm726_vm3, -1e+09, %v800_v39 }
 0x23c   : > { %v2542_v41 = vpop.f32.mrf.mxu1  ;;  %v805_v42 = vsel %vm727_vm2, %v804_v40, -inf }
 0x23d   : > { %806 = vmax.xlane.f32.xlu0 %v805_v42 }
 0x2ae   : > { %v967_v43 = vpop.f32.mrf.mxu0 }
 0x2af   : > { %v971_v44 = vsel %vm726_vm3, -1e+09, %v967_v43 }
 0x2b0   : > { %v2552_v45 = vpop.f32.mrf.mxu0  ;;  %v972_v46 = vsel %vm727_vm2, %v971_v44, -inf }
 0x2b1   : > { %973 = vmax.xlane.f32.xlu1 %v972_v46 }
 0x2b2   : > { %v1139_v47 = vpop.f32.mrf.mxu0 }
 0x2b3   : > { %v1143_v48 = vsel %vm726_vm3, -1e+09, %v1139_v47 }
 0x2b4   : > { %v2562_v49 = vpop.f32.mrf.mxu0  ;;  %v1144_v50 = vsel %vm727_vm2, %v1143_v48, -inf }
 0x2b5   : > { %1145 = vmax.xlane.f32.xlu0 %v1144_v50 }
 0x2b6   : > { %v1311_v52 = vpop.f32.mrf.mxu0 }
 0x2b7   : > { %v1315_v53 = vsel %vm726_vm3, -1e+09, %v1311_v52 }
 0x2b8   : > { %v2572_v54 = vpop.f32.mrf.mxu0  ;;  %v1316_v55 = vsel %vm727_vm2, %v1315_v53, -inf }
 0x2b9   : > { %1317 = vmax.xlane.f32.xlu0 %v1316_v55 }
 0x2ba   : > { %v1488_v56 = vpop.f32.mrf.mxu0 }
 0x2bb   : > { %v1492_v57 = vsel %vm1415_vm4, -1e+09, %v1488_v56 }
 0x2bc   : > { %v2582_v58 = vpop.f32.mrf.mxu0  ;;  %v1493_v59 = vsel %vm727_vm2, %v1492_v57, -inf }
 0x2bd   : > { %1494 = vmax.xlane.f32.xlu1 %v1493_v59 }
 0x2be   : > { %v1655_v60 = vpop.f32.mrf.mxu0 }
 0x2bf   : > { %v1659_v61 = vsel %vm1415_vm4, -1e+09, %v1655_v60 }
 0x2c0   : > { %v2592_v62 = vpop.f32.mrf.mxu0  ;;  %v1660_v63 = vsel %vm727_vm2, %v1659_v61, -inf }
 0x2c1   : > { %1661 = vmax.xlane.f32.xlu0 %v1660_v63 }
 0x2c2   : > { %v1826_v0 = vpop.f32.mrf.mxu0 }
 0x2c3   : > { %v1830_v1 = vsel %vm1415_vm4, -1e+09, %v1826_v0 }
 0x2c4   : > { %v2602_v2 = vpop.f32.mrf.mxu0  ;;  %v1831_v3 = vsel %vm727_vm2, %v1830_v1, -inf }
 0x2c5   : > { %1832 = vmax.xlane.f32.xlu1 %v1831_v3 }
 0x2c6   : > { %v1997_v4 = vpop.f32.mrf.mxu0  ;;  %v807_v9 = vpop.xlane.xlu0 %806 }
 0x2c7   : > { %v2001_v5 = vsel %vm1415_vm4, -1e+09, %v1997_v4  ;;  %v808_v11 = vsub.f32 %v804_v40, %v807_v9 }
 0x2c8   : > { %v2612_v6 = vpop.f32.mrf.mxu0  ;;  %v2002_v7 = vsel %vm727_vm2, %v2001_v5, -inf }
 0x2c9   : > { %2003 = vmax.xlane.f32.xlu0 %v2002_v7  ;;  %v809_v13 = vmul.f32 1.442695, %v808_v11 }
 0x2cb   : > { %2733 = vpow2.f32 %v809_v13 }
 0x2d6   : > { %1327 = vrot.lane.b32.xlu1 %v3387_v20, %s3026_s26 }
 0x2d8   : > { %v2734_v14 = vpop.eup %2733 }
 0x2d9   : > { %v811_v15 = vsel %vm727_vm2, %v2734_v14, 0.0 }
 0x2df   : > { %1155 = vrot.lane.b32.xlu0 %v3387_v20, %s3027_s17 }
 0x2fa   : > { %812 = vadd.xlane.f32.xlu1 %v811_v15 }
 0x33a   : > { %v974_v17 = vpop.xlane.xlu1 %973 }
 0x33b   : > { %v975_v18 = vsub.f32 %v971_v44, %v974_v17 }
 0x33d   : > { %v976_v19 = vmul.f32 1.442695, %v975_v18 }
 0x33e   : > { %v1146_v21 = vpop.xlane.xlu0 %1145 }
 0x33f   : > { %2735 = vpow2.f32 %v976_v19  ;;  %v1147_v22 = vsub.f32 %v1143_v48, %v1146_v21 }
 0x341   : > { %v1148_v23 = vmul.f32 1.442695, %v1147_v22 }
 0x342   : > { %v1318_v25 = vpop.xlane.xlu0 %1317 }
 0x343   : > { %2737 = vpow2.f32 %v1148_v23  ;;  %v1319_v26 = vsub.f32 %v1315_v53, %v1318_v25 }
 0x345   : > { %v1320_v27 = vmul.f32 1.442695, %v1319_v26 }
 0x346   : > { %v1495_v33 = vpop.xlane.xlu1 %1494 }
 0x347   : > { %2739 = vpow2.f32 %v1320_v27  ;;  %v1496_v34 = vsub.f32 %v1492_v57, %v1495_v33  ;;  %v2097_v33 = vld [vmem:[#allocation12 + $0x8] sm:$0xff] }
 0x349   : > { %v1497_v38 = vmul.f32 1.442695, %v1496_v34 }
 0x34a   : > { %v1662_v35 = vpop.xlane.xlu0 %1661 }
 0x34b   : > { %v1663_v37 = vsub.f32 %v1659_v61, %v1662_v35  ;;  %2741 = vpow2.f32 %v1497_v38  ;;  %v2096_v35 = vld [vmem:[#allocation12] sm:$0xff] }
 0x34c   : > { %v2736_v20 = vpop.eup %2735 }
 0x34d   : > { %v978_v28 = vsel %vm727_vm2, %v2736_v20, 0.0  ;;  %v1664_v41 = vmul.f32 1.442695, %v1663_v37 }
 0x34e   : > { %979 = vadd.xlane.f32.xlu0 %v978_v28  ;;  %v1833_v36 = vpop.xlane.xlu1 %1832 }
 0x34f   : > { %v1834_v39 = vsub.f32 %v1830_v1, %v1833_v36  ;;  %2743 = vpow2.f32 %v1664_v41 }
 0x350   : > { %v2738_v29 = vpop.eup %2737 }
 0x351   : > { %v1150_v30 = vsel %vm727_vm2, %v2738_v29, 0.0  ;;  %v1835_v42 = vmul.f32 1.442695, %v1834_v39 }
 0x352   : > { %1151 = vadd.xlane.f32.xlu1 %v1150_v30  ;;  %v2004_v40 = vpop.xlane.xlu0 %2003  ;;  %v1328_v45 = vpop.permute.xlu1 %1327  ;;  %v2099_v30 = vld [vmem:[#allocation12 + $0x18] sm:$0xff] }
 0x353   : > { %v2005_v43 = vsub.f32 %v2001_v5, %v2004_v40  ;;  %2745 = vpow2.f32 %v1835_v42  ;;  %2618 = vmatprep.subr.mxu0 %v2099_v30 }
 0x354   : > { %v3466_v31 = vpop.eup %2739  ;;  %2619 = vmatpush3.msra.mxu0 %v2099_v30 }
 0x355   : > { %v1322_v32 = vsel %vm727_vm2, %v3466_v31, 0.0  ;;  %v2006_v44 = vmul.f32 1.442695, %v2005_v43 }
 0x356   : > { %1323 = vadd.xlane.f32.xlu0 %v1322_v32  ;;  %v1156_v57 = vpop.permute.xlu0 %1155 }
 0x357   : > { %2747 = vpow2.f32 %v2006_v44 }
 0x358   : > { %v2742_v46 = vpop.eup %2741 }
 0x359   : > { %v1499_v49 = vsel %vm727_vm2, %v2742_v46, 0.0 }
 0x35c   : > { %v2744_v48 = vpop.eup %2743 }
 0x35d   : > { %v1666_v52 = vsel %vm727_vm2, %v2744_v48, 0.0 }
 0x360   : > { %v3475_v50 = vpop.eup %2745 }
 0x361   : > { %v1837_v51 = vsel %vm727_vm2, %v3475_v50, 0.0 }
 0x363   : > { %1671 = vrot.lane.b32.xlu1 %v3398_v24, %s3024_s1 }
 0x364   : > { %v3480_v53 = vpop.eup %2747 }
 0x365   : > { %v2008_v54 = vsel %vm727_vm2, %v3480_v53, 0.0 }
 0x36c   : > { %1504 = vrot.lane.b32.xlu0 %v3398_v24, %s3025_s29  ;;  %s3661_s29 = sld [smem:[#allocation29_spill]] }
 0x383   : > { %v813_v47 = vpop.xlane.xlu1 %812 }
 0x384   : > { %2749 = vrcp.f32 %v813_v47 }
 0x387   : > { %1500 = vadd.xlane.f32.xlu1 %v1499_v49  ;;  %v2452_v49 = vld [vmem:[%s3601_s8] ss:$0 sm:$0xff] }
 0x38b   : > { %1838 = vadd.xlane.f32.xlu1 %v1837_v51  ;;  %1667 = vadd.xlane.f32.xlu0 %v1666_v52 }
 0x38f   : > { %2009 = vadd.xlane.f32.xlu1 %v2008_v54 }
 0x391   : > { %v2750_v55 = vpop.eup %2749 }
 0x392   : > { %v815_v56 = vmul.f32 %v2750_v55, %v2734_v14 }
 0x394   : > { %2546 = vmatmul.mubr.msk.f32.vlgmr.msra.gmra.mxu1 %vm727_vm2, %v815_v56 }
 0x395   : > { %2554 = vmatpush3.msra.mxu1 %v984_v16  ;;  %2555 = vmatprep.mubr.msk.f32.mxu1 %vm3020_vm1, %v3019_v12 }
 0x396   : > { %2563 = vmatprep.subr.mxu1 %v3019_v12 }
 0x3a0   : > { %2013 = vrot.lane.b32.xlu1 %v3398_v24, %s3026_s26  ;;  %s3546_s26 = scalar_lea.hbm %s3661_s29, %s2465_s16 }
 0x3a1   : > { %1842 = vrot.lane.b32.xlu0 %v3398_v24, %s3027_s17  ;;  %s2238_s17 = scalar_lea.sflag [#allocation5], %s3329_s25 }
 0x3d7   : > { %v980_v58 = vpop.xlane.xlu0 %979 }
 0x3d8   : > { %2751 = vrcp.f32 %v980_v58 }
 0x3db   : > { %v1152_v59 = vpop.xlane.xlu1 %1151 }
 0x3dc   : > { %2753 = vrcp.f32 %v1152_v59 }
 0x3df   : > { %v1324_v60 = vpop.xlane.xlu0 %1323  ;;  %v1672_v3 = vpop.permute.xlu1 %1671 }
 0x3e0   : > { %2755 = vrcp.f32 %v1324_v60 }
 0x3e3   : > { %v1505_v2 = vpop.permute.xlu0 %1504 }
 0x3e5   : > { %v2752_v61 = vpop.eup %2751 }
 0x3e6   : > { %v982_v62 = vmul.f32 %v2752_v61, %v2736_v20 }
 0x3e8   : > { %2556 = vmatmul.mubr.msk.f32.vlgmr.msra.gmra.mxu1 %vm727_vm2, %v982_v62 }
 0x3e9   : > { %v2754_v63 = vpop.eup %2753  ;;  %2564 = vmatpush3.msra.mxu1 %v1156_v57  ;;  %2565 = vmatprep.mubr.msk.f32.mxu1 %vm3020_vm1, %v3019_v12 }
 0x3ea   : > { %2573 = vmatprep.subr.mxu1 %v3019_v12  ;;  %v1154_v0 = vmul.f32 %v2754_v63, %v2738_v29 }
 0x3ec   : > { %2566 = vmatmul.mubr.msk.f32.vlgmr.msra.gmra.mxu1 %vm727_vm2, %v1154_v0 }
 0x3ed   : > { %v2756_v24 = vpop.eup %2755  ;;  %2574 = vmatpush3.msra.mxu1 %v1328_v45  ;;  %2575 = vmatprep.mubr.msk.f32.mxu1 %vm3020_vm1, %v3019_v12 }
 0x3ee   : > { %2583 = vmatprep.subr.mxu1 %v3019_v12  ;;  %v1326_v1 = vmul.f32 %v2756_v24, %v3466_v31  ;;  %v2098_v31 = vld [vmem:[#allocation12 + $0x10] sm:$0xff] }
 0x3ef   : > { %2620 = vmatprep.subr.mxu0 %v2098_v31 }
 0x3f0   : > { %2576 = vmatmul.mubr.msk.f32.vlgmr.msra.gmra.mxu1 %vm727_vm2, %v1326_v1  ;;  %2621 = vmatpush3.msra.mxu0 %v2098_v31 }
 0x3f1   : > { %2584 = vmatpush3.msra.mxu1 %v1505_v2  ;;  %2585 = vmatprep.mubr.msk.f32.mxu1 %vm3020_vm1, %v3019_v12 }
 0x3f2   : > { %2593 = vmatprep.subr.mxu1 %v3019_v12  ;;  %2622 = vmatprep.subr.mxu0 %v2097_v33 }
 0x3f3   : > { %2623 = vmatpush3.msra.mxu0 %v2097_v33 }
 0x3f4   : > { %2624 = vmatprep.subr.mxu0 %v2096_v35 }
 0x3f5   : > { %2625 = vmatpush3.msra.mxu0 %v2096_v35 }
 0x410   : > { %v1501_v4 = vpop.xlane.xlu1 %1500 }
 0x411   : > { %2757 = vrcp.f32 %v1501_v4 }
 0x414   : > { %v1839_v5 = vpop.xlane.xlu1 %1838  ;;  %v1668_v6 = vpop.xlane.xlu0 %1667 }
 0x415   : > { %2759 = vrcp.f32 %v1668_v6 }
 0x416   : > { %2761 = vrcp.f32 %v1839_v5 }
 0x418   : > { %v2010_v7 = vpop.xlane.xlu1 %2009  ;;  %v1843_v16 = vpop.permute.xlu0 %1842 }
 0x419   : > { %2763 = vrcp.f32 %v2010_v7 }
 0x41c   : > { %v2014_v19 = vpop.permute.xlu1 %2013 }
 0x41e   : > { %v2758_v9 = vpop.eup %2757 }
 0x41f   : > { %v1503_v11 = vmul.f32 %v2758_v9, %v2742_v46  ;;  %v2455_v9 = vld [vmem:[%s3602_s9] ss:$0 sm:$0xff] }
 0x421   : > { %2586 = vmatmul.mubr.msk.f32.vlgmr.msra.gmra.mxu1 %vm727_vm2, %v1503_v11 }
 0x422   : > { %2594 = vmatpush3.msra.mxu1 %v1672_v3  ;;  %2595 = vmatprep.mubr.msk.f32.mxu1 %vm3020_vm1, %v3019_v12  ;;  %v2760_v13 = vpop.eup %2759 }
 0x423   : > { %2603 = vmatprep.subr.mxu1 %v3019_v12  ;;  %v1670_v14 = vmul.f32 %v2760_v13, %v2744_v48  ;;  %v2762_v15 = vpop.eup %2761  ;;  %v2456_v13 = vld [vmem:[%s3603_s10] ss:$0 sm:$0xff] }
 0x424   : > { %v1841_v17 = vmul.f32 %v2762_v15, %v3475_v50 }
 0x425   : > { %2596 = vmatmul.mubr.msk.f32.vlgmr.msra.gmra.mxu1 %vm727_vm2, %v1670_v14 }
 0x426   : > { %2604 = vmatpush3.msra.mxu1 %v1843_v16  ;;  %2605 = vmatprep.mubr.msk.f32.mxu1 %vm3020_vm1, %v3019_v12  ;;  %v2764_v18 = vpop.eup %2763 }
 0x427   : > { %2613 = vmatprep.subr.mxu1 %v3019_v12  ;;  %v2012_v21 = vmul.f32 %v2764_v18, %v3480_v53 }
 0x429   : > { %2606 = vmatmul.mubr.msk.f32.vlgmr.msra.gmra.mxu1 %vm727_vm2, %v1841_v17 }
 0x42a   : > { %2614 = vmatpush3.msra.mxu1 %v2014_v19  ;;  %2615 = vmatprep.mubr.msk.f32.mxu1 %vm3020_vm1, %v3019_v12 }
 0x42d   : > { %2616 = vmatmul.mubr.msk.f32.vlgmr.msra.gmra.mxu1 %vm727_vm2, %v2012_v21 }
 0x454   : > { %v888_v22 = vpop.f32.mrf.mxu1 }
 0x455   : > { %892 = vst.msk [vmem:[#allocation2] sm:$0xff] %vm727_vm2, %v888_v22 }
 0x456   : > { %v2547_v23 = vpop.f32.mrf.mxu1 }
 0x4a8   : > { %v1055_v25 = vpop.f32.mrf.mxu1 }
 0x4a9   : > { %1060 = vrot.lane.b32.xlu0 %v1055_v25, %s3028_s5 }
 0x4aa   : > { %v2557_v26 = vpop.f32.mrf.mxu1 }
 0x4ac   : > { %v1227_v27 = vpop.f32.mrf.mxu1 }
 0x4ad   : > { %1232 = vrot.lane.b32.xlu1 %v1227_v27, %s3029_s24 }
 0x4ae   : > { %v2567_v20 = vpop.f32.mrf.mxu1 }
 0x4b0   : > { %v1399_v28 = vpop.f32.mrf.mxu1 }
 0x4b1   : > { %1404 = vrot.lane.b32.xlu1 %v1399_v28, %s3030_s19 }
 0x4b2   : > { %v2577_v12 = vpop.f32.mrf.mxu1 }
 0x4e1   : > { %v1576_v29 = vpop.f32.mrf.mxu1 }
 0x4e2   : > { %1580 = vst.msk [vmem:[#allocation2 + $0x8] sm:$0xff] %vm727_vm2, %v1576_v29 }
 0x4e3   : > { %v2587_v32 = vpop.f32.mrf.mxu1 }
 0x4e5   : > { %v1743_v34 = vpop.f32.mrf.mxu1 }
 0x4e6   : > { %1748 = vrot.lane.b32.xlu0 %v1743_v34, %s3028_s5 }
 0x4e7   : > { %v2597_v36 = vpop.f32.mrf.mxu1 }
 0x4e9   : > { %v1914_v37 = vpop.f32.mrf.mxu1 }
 0x4ea   : > { %1919 = vrot.lane.b32.xlu0 %v1914_v37, %s3029_s24  ;;  %s2935_s24 = sshll.u32 %s3031_s14, 4  ;;  %s2936_s24 = int_to_ptr.vmem [resolvable:$false] %s2935_s24 }
 0x4eb   : > { %v2607_v38 = vpop.f32.mrf.mxu1  ;;  %p2938_p8 = scmp.lt.s32.totalorder %s3548_s23, %s2936_s24 }
 0x4ed   : > { %v2085_v39 = vpop.f32.mrf.mxu1 }
 0x4ee   : > { %2090 = vrot.lane.b32.xlu1 %v2085_v39, %s3030_s19  ;;  %s2937_s19 = scalar_lea.vmem %s2936_s24, 512 }
 0x4ef   : > { %v2617_v40 = vpop.f32.mrf.mxu1  ;;  %p2939_p6 = scmp.lt.s32.totalorder %s2937_s19, %s2931_s21 }
 0x4f1   : > { %p2940_p9 = por %p2939_p6, %p2938_p8 }
 0x4f3   : > { %p2941_p10 = pnand %p2940_p9, %p2934_p3 }
 0x51b   : > { %v1061_v41 = vpop.permute.xlu0 %1060 }
 0x51c   : > { %1064 = vst.msk [vmem:[#allocation2] sm:$0xff] %vm1063_vm5, %v1061_v41 }
 0x51f   : > { %v1233_v42 = vpop.permute.xlu1 %1232 }
 0x520   : > { %1236 = vst.msk [vmem:[#allocation2] sm:$0xff] %vm1235_vm6, %v1233_v42 }
 0x523   : > { %v1405_v43 = vpop.permute.xlu1 %1404 }
 0x524   : > { %1408 = vst.msk [vmem:[#allocation2] sm:$0xff] %vm1407_vm7, %v1405_v43 }
 0x52b   : > { %v2094_v44 = vld [vmem:[#allocation2] sm:$0xff] }
 0x52c   : > { %2626 = vmatprep.mubr.msk.f32.mxu0 %vm545_vm0, %v2094_v44 }
 0x558   : > { %v1749_v45 = vpop.permute.xlu0 %1748 }
 0x559   : > { %1751 = vst.msk [vmem:[#allocation2 + $0x8] sm:$0xff] %vm1063_vm5, %v1749_v45 }
 0x55c   : > { %v1920_v46 = vpop.permute.xlu0 %1919 }
 0x55d   : > { %1922 = vst.msk [vmem:[#allocation2 + $0x8] sm:$0xff] %vm1235_vm6, %v1920_v46 }
 0x560   : > { %v2091_v47 = vpop.permute.xlu1 %2090 }
 0x561   : > { %2093 = vst.msk [vmem:[#allocation2 + $0x8] sm:$0xff] %vm1407_vm7, %v2091_v47 }
 0x568   : > { %v2095_v48 = vld [vmem:[#allocation2 + $0x8] sm:$0xff] }
 0x569   : > { %2627 = vmatmul.mubr.msk.f32.vlgmr.msra.gmra.mxu0 %vm545_vm0, %v2095_v48 }
 0x629   : > { %v2628_v50 = vpop.f32.mrf.mxu0 }
 0x62a   : > { %v2185_v51 = vadd.f32 %v2628_v50, %v2452_v49 }
 0x62b   : > { %v2179_v52 = vpop.f32.mrf.mxu0 }
 0x62c   : > { %v2180_v53 = vadd.f32 %v2452_v49, %v2179_v52  ;;  %v2189_v54 = vadd.f32 %v2185_v51, %v3365_v10 }
 0x62e   : > { %v2195_v55 = vsel %vm545_vm0, %v2189_v54, 0.0  ;;  %v2188_v56 = vadd.f32 %v2180_v53, %v3359_v8 }
 0x62f   : > { %2196 = vadd.xlane.f32.xlu1 %v2195_v55 }
 0x630   : > { %v2192_v57 = vsel %vm545_vm0, %v2188_v56, 0.0 }
 0x631   : > { %2193 = vadd.xlane.f32.xlu0 %v2192_v57 }
 0x6b8   : > { %v2197_v58 = vpop.xlane.xlu1 %2196 }
 0x6b9   : > { %v2200_v59 = vmul.f32 0.03125, %v2197_v58 }
 0x6ba   : > { %v2194_v60 = vpop.xlane.xlu0 %2193 }
 0x6bb   : > { %v2199_v61 = vmul.f32 0.03125, %v2194_v60  ;;  %v2202_v62 = vsub.f32 %v2189_v54, %v2200_v59 }
 0x6bd   : > { %v2201_v63 = vsub.f32 %v2188_v56, %v2199_v61  ;;  %v2204_v1 = vmul.f32 %v2202_v62, %v2202_v62 }
 0x6bf   : > { %v2203_v0 = vmul.f32 %v2201_v63, %v2201_v63  ;;  %v2208_v10 = vsel %vm545_vm0, %v2204_v1, 0.0 }
 0x6c1   : > { %v2205_v24 = vsel %vm545_vm0, %v2203_v0, 0.0 }
 0x6c2   : > { %2206 = vadd.xlane.f32.xlu0 %v2205_v24 }
 0x6c6   : > { %2209 = vadd.xlane.f32.xlu0 %v2208_v10 }
 0x74b   : > { %v2207_v2 = vpop.xlane.xlu0 %2206 }
 0x74c   : > { %v2211_v8 = vmul.f32 0.03125, %v2207_v2 }
 0x74e   : > { %v2213_v3 = vadd.f32 1e-06, %v2211_v8 }
 0x74f   : > { %v2210_v4 = vpop.xlane.xlu0 %2209 }
 0x750   : > { %2765 = vrsqrt.f32 %v2213_v3  ;;  %v2212_v5 = vmul.f32 0.03125, %v2210_v4 }
 0x752   : > { %v2214_v6 = vadd.f32 1e-06, %v2212_v5 }
 0x754   : > { %2767 = vrsqrt.f32 %v2214_v6 }
 0x75d   : > { %v2766_v7 = vpop.eup %2765 }
 0x75e   : > { %v2217_v11 = vmul.f32 %v2766_v7, %v2201_v63 }
 0x760   : > { %v2225_v14 = vmul.f32 %v2455_v9, %v2217_v11 }
 0x761   : > { %v2768_v15 = vpop.eup %2767 }
 0x762   : > { %v2233_v16 = vadd.f32 %v2456_v13, %v2225_v14  ;;  %v2218_v17 = vmul.f32 %v2768_v15, %v2202_v62 }
 0x764   : > { %v2226_v18 = vmul.f32 %v2455_v9, %v2218_v17  ;;  %2235 = vst.msk [vmem:[%s525_s11] sm:$0xff] %vm545_vm0, %v2233_v16 }
 0x766   : > { %v2234_v19 = vadd.f32 %v2456_v13, %v2226_v18 }
 0x768   : > { %2236 = vst.msk [vmem:[%s525_s11 + $0x8] sm:$0xff] %vm545_vm0, %v2234_v19 }
 0x769   : > { %2944 = shalt.err (!%p2941_p10)
}
 0x76a   : > { %s2945_s12 = scalar_lea.hbm %s3546_s26, 256  ;;  %s2949_s15 = scalar_lea.hbm %s3661_s29, 512 }
 0x76b   : > { %p2946_p11 = scmp.ne.s32.totalorder %s3546_s26, %s2945_s12  ;;  %p2950_p5 = scmp.lt.s32.totalorder %s3546_s26, %s3661_s29 }
 0x76c   : > { %p2951_p12 = scmp.lt.s32.totalorder %s2949_s15, %s2945_s12 }
 0x76d   : > { %p2947_p1 = pnand %p2946_p11, %p3662_p2 }
 0x76e   : > { %p2952_p0 = por %p2951_p12, %p2950_p5 }
 0x76f   : > { %p2948_p4 = pneg %p2947_p1 }
 0x771   : > { %p2953_p13 = pnand %p2952_p0, %p2948_p4 }
 0x773   : > { %2956 = shalt.err (!%p2953_p13)
}
 0x774   : > { %s3032_s16 = smov 128  }
 0x775   : > { %2647 = dma.vmem_to_hbm [thread:$0]  (%p3662_p2), %s3548_s23, 256, %s3546_s26, %s2238_s17, %s3032_s16, %s3032_s16, %s3028_s5  }
 0x776 PF: > { %s3663_s11 = sld [smem:[#allocation20_spill]]  ;;  %p3666_p3 = scmp.ge.s32.totalorder %s3007_s20, 2 }
 0x777   : > { %s3664_s30 = sld [smem:[#allocation25_spill]] }
 0x77c   : > { %s2266_s1 = sand.u32 1, %s3663_s11  }
 0x77d   : > { %p3665_p7 = scmp.ne.s32.totalorder %s3664_s30, 0  ;;  %s2267_s21 = scalar_lea.sflag [#allocation5], %s2266_s1 }
 0x77f   : > { %p2670_p8 = pnand %p3666_p3, %p3665_p7 }
 0x781   : > { %p2671_p6 = pneg %p2670_p8 }
 0x783   : > { %2990 = dma.done.wait (%p2671_p6), %s2267_s21, 256  }
 0x784   : > { %2992 = vsyncadd (%p2671_p6), %s2267_s21, 4294967040  ;;  %s3667_s20 = sld [smem:[#allocation22_spill]]  ;;  %s3670_s17 = smov %s2999_s18 }
 0x785   : > { %s3668_s3 = sld [smem:[#allocation21_spill]] }
 0x786   : > { %s3669_s19 = sld [smem:[#allocation23_spill]] }
 0x78a   : > { %p29_p9 = scmp.ge.s32.totalorder %s3667_s20, 4  }
 0x78b   : > { %s3671_s18 = smov %s3668_s3 }
 0x78c   :  { %31 = sbr.rel (!%p29_p9) target bundleno = 14 (0xe), region = 146 }
 0x791   :  { %2272 = vsyncpa [#allocation4], 1 }
 0x792   :  { %2274 = vsyncpa [#allocation4 + $0x1], 1 }
 0x793   :  { %2275 = vsyncpa [#allocation7], 1 }
 0x794   :  { %2277 = vsyncpa [#allocation7 + $0x1], 1 }
 0x795   :  { %2278 = vsyncpa [#allocation10], 1 }
 0x796   :  { %2279 = vsyncpa [#allocation13], 1 }
 0x797   :  { %2280 = vsyncpa [#allocation5], 1 }
 0x798   :  { %2282 = vsyncpa [#allocation5 + $0x1], 1 }

</bundles_post_ra>
